<compile_context>
chip_gen: v6e
topology: v6e:2x2x1
jax: 0.10.0
libtpu: 0.0.40
codegen_flags: <defaults>
</compile_context>

<pallas_src>
import jax
import jax.numpy as jnp
import numpy as np
from jax import lax
from jax.experimental import pallas as pl
from jax.experimental.pallas import tpu as pltpu


def _round_up(x, m):
    return (x + m - 1) // m * m


# ----------------------------------------------------------------------------
# Fused kernel: chunk input projection + time-chunked GRU recurrence +
# classifier at the last chunk.
#   args: (scalar-prefetch maxlen)
#         (lengths, emb chunk, W_i_cat, b_i_cat, W_h_cat, b_hn, W_c, b_c)
#         (out) (h scratch, xproj scratch)
# ----------------------------------------------------------------------------
def gru_fused_kernel(maxlen_ref, len_ref, x_ref, w_i_ref, b_i_ref, w_h_ref,
                     b_hn_ref, wc_ref, bc_ref, out_ref, h_scratch, xp_scratch):
    t_blk = pl.program_id(1)
    chunk = x_ref.shape[0]              # Tc (static)
    bt = x_ref.shape[1]                 # Bt (static, multiple of 8)
    hdim = h_scratch.shape[1]           # Hp (static, multiple of 128)
    t0 = t_blk * chunk

    @pl.when(t_blk == 0)
    def _init():
        h_scratch[...] = jnp.zeros_like(h_scratch)

    # Skip chunks entirely past the longest sequence (all rows frozen anyway).
    # Their embedding DMA is also elided via the clamped index_map.
    @pl.when(t0 < maxlen_ref[0])
    def _run_chunk():
        w_i = w_i_ref[...]              # [E, 3Hp] bf16, fused W_ir|W_iz|W_in
        b_i = b_i_ref[...]              # [1, 3Hp] f32, fused (merged) biases

        # ---- hoisted input projection for the whole chunk ----------------
        # Tc independent MXU matmuls (bf16 in, f32 accumulate) into VMEM
        # scratch, off the serial recurrence path.  Streams only the bf16
        # embedding chunk from HBM (no f32 X_proj round trip).
        for tt in range(chunk):         # static Python unroll (Tc is small)
            xp_scratch[tt] = (
                jnp.dot(x_ref[tt], w_i, preferred_element_type=jnp.float32)
                + b_i)

        lengths = len_ref[...]          # [Bt, 1] int32
        w_h = w_h_ref[...]              # [Hp, 3Hp] bf16, fused W_hr|W_hz|W_hn
        # Hoist the broadcast out of the unrolled loop (no CSE for broadcasts).
        b_hn_b = jnp.broadcast_to(b_hn_ref[...], (bt, hdim))   # [Bt, Hp] f32

        def step(tt, h):
            xp = xp_scratch[tt]         # [Bt, 3Hp] f32 (biases already folded)
            # Single fused recurrent matmul on the MXU (bf16 in, f32 accum).
            hh = jnp.dot(h.astype(jnp.bfloat16), w_h,
                         preferred_element_type=jnp.float32)
            # Gate math stays in f32 (v5e has no bf16 VALU/EUP).
            r = jax.nn.sigmoid(xp[:, :hdim] + hh[:, :hdim])
            z = jax.nn.sigmoid(xp[:, hdim:2 * hdim] + hh[:, hdim:2 * hdim])
            n = jnp.tanh(xp[:, 2 * hdim:] + r * (hh[:, 2 * hdim:] + b_hn_b))
            h_new = (1.0 - z) * n + z * h
            # Freeze rows past their true length (pack_padded semantics); this
            # also neutralizes padded time rows whose xp is bias-only.
            valid = lengths > (t0 + tt)                 # [Bt, 1]
            return jnp.where(valid, h_new, h)

        # Bounded unroll keeps LLO visibility without vreg blow-up at large Bt.
        h_scratch[...] = lax.fori_loop(0, chunk, step, h_scratch[...],
                                       unroll=min(chunk, 8))

    @pl.when(t_blk == pl.num_programs(1) - 1)
    def _classify():
        logits = (jnp.dot(h_scratch[...].astype(jnp.bfloat16), wc_ref[...],
                          preferred_element_type=jnp.float32) + bc_ref[...])
        out_ref[...] = logits.astype(out_ref.dtype)


# ----------------------------------------------------------------------------
# Wrapper: padding / weight fusion / single pallas_call
# ----------------------------------------------------------------------------
def textgru_forward(input_ids, seq_lengths, params, *, time_chunk=8,
                    batch_block=None):
    f32, bf16 = jnp.float32, jnp.bfloat16

    # Time-major embedding gather (glue); avoids materializing an extra
    # [B, T, E] transpose copy in HBM.
    emb = params["embedding"][input_ids.T].astype(bf16)      # [T, B, E]
    T, B, E = emb.shape
    H = params["w_hr"].shape[0]
    C = params["wc"].shape[1]

    # Lane/sublane-aligned padded sizes.
    Hp = _round_up(H, 128)
    Cp = _round_up(C, 128)
    Bp = _round_up(B, 8)
    Tc = time_chunk
    Tp = _round_up(T, Tc)

    if batch_block is None:
        # Split the batch across grid tiles (megacore-parallel on v7x) when it
        # is big enough to keep the MXU M-dimension healthy per core.
        Bt = Bp // 2 if (Bp >= 512 and Bp % 16 == 0) else Bp
    else:
        Bt = batch_block
    assert Bp % Bt == 0 and Bt % 8 == 0

    # --- fuse + pad weights (zeros in padded lanes keep padded state at 0) ---
    w_i = jnp.zeros((E, 3 * Hp), bf16)
    w_i = w_i.at[:, 0:H].set(params["w_ir"].astype(bf16))
    w_i = w_i.at[:, Hp:Hp + H].set(params["w_iz"].astype(bf16))
    w_i = w_i.at[:, 2 * Hp:2 * Hp + H].set(params["w_in"].astype(bf16))

    b_i = jnp.zeros((1, 3 * Hp), f32)
    b_i = b_i.at[:, 0:H].set(params["b_r"])        # b_ir + b_hr merged
    b_i = b_i.at[:, Hp:Hp + H].set(params["b_z"])  # b_iz + b_hz merged
    b_i = b_i.at[:, 2 * Hp:2 * Hp + H].set(params["b_in"])

    w_h = jnp.zeros((Hp, 3 * Hp), bf16)
    w_h = w_h.at[:H, 0:H].set(params["w_hr"].astype(bf16))
    w_h = w_h.at[:H, Hp:Hp + H].set(params["w_hz"].astype(bf16))
    w_h = w_h.at[:H, 2 * Hp:2 * Hp + H].set(params["w_hn"].astype(bf16))

    b_hn = jnp.zeros((1, Hp), f32).at[:, :H].set(params["b_hn"])
    wc = jnp.zeros((Hp, Cp), bf16).at[:H, :C].set(params["wc"].astype(bf16))
    bc = jnp.zeros((1, Cp), f32).at[:, :C].set(params["bc"])

    # --- pad activations (time + batch), embeddings stay bf16 ---
    x = jnp.pad(emb, ((0, Tp - T), (0, Bp - B), (0, 0)))     # [Tp, Bp, E]

    lengths = jnp.zeros((Bp, 1), jnp.int32).at[:B, 0].set(
        seq_lengths.astype(jnp.int32))
    maxlen = jnp.max(seq_lengths).astype(jnp.int32)[None]    # SMEM prefetch

    nb = Bp // Bt
    nt = Tp // Tc

    # VMEM budget (input/output blocks double-buffered, constant weight blocks
    # single-buffered, plus scratch) -> explicit vmem_limit_bytes so tile
    # choices fail loudly instead of silently OOM-ing v7x (64 MiB) / v5e
    # (16 MiB scoped default).
    vmem_bytes = (
        2 * Tc * Bt * E * 2            # emb chunk (bf16, double-buffered)
        + 2 * max(Bt, 8) * 128 * 4     # lengths (lane-padded)
        + E * 3 * Hp * 2               # W_i  (Buffered(1))
        + 8 * 3 * Hp * 4               # b_i
        + Hp * 3 * Hp * 2              # W_h
        + 8 * Hp * 4                   # b_hn
        + Hp * Cp * 2                  # W_c
        + 8 * Cp * 4                   # b_c
        + 2 * Bt * Cp * 4              # out block
        + Bt * Hp * 4                  # h scratch
        + Tc * Bt * 3 * Hp * 4         # chunk input-projection scratch
    )
    vmem_limit = int(min(max(2 * vmem_bytes, 32 << 20), 64 << 20))

    def x_index_map(b, t, ml):
        # Clamp fully padded time chunks onto the last active chunk so skipped
        # grid steps re-reference the resident block and issue no DMA.
        last_active = jnp.maximum(pl.cdiv(ml[0], Tc) - 1, 0)
        return (jnp.minimum(t, last_active), b, 0)

    single = pl.Buffered(1)    # constant-index blocks: no double buffering

    out_padded = pl.pallas_call(
        gru_fused_kernel,
        out_shape=jax.ShapeDtypeStruct((Bp, Cp), f32),
        grid_spec=pltpu.PrefetchScalarGridSpec(
            num_scalar_prefetch=1,                          # maxlen -> SMEM
            grid=(nb, nt),
            in_specs=[
                pl.BlockSpec((Bt, 1), lambda b, t, ml: (b, 0)),       # lens
                pl.BlockSpec((Tc, Bt, E), x_index_map),               # emb
                pl.BlockSpec((E, 3 * Hp), lambda b, t, ml: (0, 0),
                             pipeline_mode=single),                   # W_i
                pl.BlockSpec((1, 3 * Hp), lambda b, t, ml: (0, 0),
                             pipeline_mode=single),                   # b_i
                pl.BlockSpec((Hp, 3 * Hp), lambda b, t, ml: (0, 0),
                             pipeline_mode=single),                   # W_h
                pl.BlockSpec((1, Hp), lambda b, t, ml: (0, 0),
                             pipeline_mode=single),                   # b_hn
                pl.BlockSpec((Hp, Cp), lambda b, t, ml: (0, 0),
                             pipeline_mode=single),                   # W_c
                pl.BlockSpec((1, Cp), lambda b, t, ml: (0, 0),
                             pipeline_mode=single),                   # b_c
            ],
            out_specs=pl.BlockSpec((Bt, Cp), lambda b, t, ml: (b, 0)),
            scratch_shapes=[
                pltpu.VMEM((Bt, Hp), f32),           # hidden state
                pltpu.VMEM((Tc, Bt, 3 * Hp), f32),   # chunk input projection
            ],
        ),
        # Batch tiles are independent (megacore-parallel on v7x); the time
        # axis carries the recurrence so it must stay "arbitrary".
        compiler_params=pltpu.CompilerParams(
            dimension_semantics=("parallel", "arbitrary"),
            vmem_limit_bytes=vmem_limit),
    )(maxlen, lengths, x, w_i, b_i, w_h, b_hn, wc, bc)

    # Drop batch / class padding.
    return out_padded[:B, :C]
    # TODO(synk): when B*T >> vocab, precompute embedding @ [W_ir|W_iz|W_in]
    # once ([V, 3Hp]) and replace the in-kernel input projection by a gather.


# ----------------------------------------------------------------------------
# Pure-JAX reference (same math, same bf16 rounding points) for sanity check.
# ----------------------------------------------------------------------------
def textgru_reference(input_ids, seq_lengths, params):
    bf = lambda a: a.astype(jnp.bfloat16).astype(jnp.float32)
    emb = params["embedding"][input_ids]            # [B, T, E] f32
    B, T, _ = emb.shape
    H = params["w_hr"].shape[0]
    h = jnp.zeros((B, H), jnp.float32)
    for t in range(T):
        x_t = bf(emb[:, t, :])
        xr = x_t @ bf(params["w_ir"]) + params["b_r"]
        xz = x_t @ bf(params["w_iz"]) + params["b_z"]
        xn = x_t @ bf(params["w_in"]) + params["b_in"]
        hb = bf(h)
        hr = hb @ bf(params["w_hr"])
        hz = hb @ bf(params["w_hz"])
        hn = hb @ bf(params["w_hn"]) + params["b_hn"]
        r = jax.nn.sigmoid(xr + hr)
        z = jax.nn.sigmoid(xz + hz)
        n = jnp.tanh(xn + r * hn)
        h_new = (1.0 - z) * n + z * h
        mask = seq_lengths.reshape(B, 1) > t
        h = jnp.where(mask, h_new, h)
    return bf(h) @ bf(params["wc"]) + params["bc"]


def init_params(key, vocab_size, embedding_size, hidden_size, num_classes):
    ks = jax.random.split(key, 12)
    s = 1.0 / np.sqrt(hidden_size)
    u = lambda k, shape: jax.random.uniform(k, shape, jnp.float32, -s, s)
    return {
        "embedding": jax.random.normal(ks[0], (vocab_size, embedding_size),
                                       jnp.float32),
        "w_ir": u(ks[1], (embedding_size, hidden_size)),
        "w_iz": u(ks[2], (embedding_size, hidden_size)),
        "w_in": u(ks[3], (embedding_size, hidden_size)),
        "w_hr": u(ks[4], (hidden_size, hidden_size)),
        "w_hz": u(ks[5], (hidden_size, hidden_size)),
        "w_hn": u(ks[6], (hidden_size, hidden_size)),
        # b_r = b_ir + b_hr, b_z = b_iz + b_hz (mergeable); b_in / b_hn are not.
        "b_r": u(ks[7], (1, hidden_size)),
        "b_z": u(ks[8], (1, hidden_size)),
        "b_in": u(ks[9], (1, hidden_size)),
        "b_hn": u(ks[10], (1, hidden_size)),
        "wc": u(ks[11], (hidden_size, num_classes)),
        "bc": jnp.zeros((1, num_classes), jnp.float32),
    }


if __name__ == "__main__":
    # Small config: embedding=16, hidden=32, classes=4, vocab=50.
    E, H, C, VOCAB = 16, 32, 4, 50
    key = jax.random.PRNGKey(0)
    k_tok, k_par, k_tok2, k_len2 = jax.random.split(key, 4)
    params = init_params(k_par, VOCAB, E, H, C)

    # Test 1: batch=4, seq=20 with max length 10 and time_chunk=8 exercises
    # within-chunk freezing, chunk carry, AND the maxlen-clamped skipped chunk.
    B1, T1 = 4, 20
    ids1 = jax.random.randint(k_tok, (B1, T1), 0, VOCAB, dtype=jnp.int32)
    lens1 = jnp.array([10, 5, 3, 7], dtype=jnp.int32)
    out1 = jax.block_until_ready(textgru_forward(ids1, lens1, params))
    ref1 = textgru_reference(ids1, lens1, params)
    np.testing.assert_allclose(np.asarray(out1), np.asarray(ref1),
                               rtol=2e-2, atol=2e-2)
    assert out1.shape == (B1, C)

    # Test 2: batch=16 with batch_block=8 exercises the multi-batch-tile
    # ("parallel") grid path.
    B2, T2 = 16, 12
    ids2 = jax.random.randint(k_tok2, (B2, T2), 0, VOCAB, dtype=jnp.int32)
    lens2 = jax.random.randint(k_len2, (B2,), 1, T2 + 1, dtype=jnp.int32)
    out2 = jax.block_until_ready(
        textgru_forward(ids2, lens2, params, batch_block=8))
    ref2 = textgru_reference(ids2, lens2, params)
    np.testing.assert_allclose(np.asarray(out2), np.asarray(ref2),
                               rtol=2e-2, atol=2e-2)
    assert out2.shape == (B2, C)

    print("KERNEL_OK")
</pallas_src>

<mosaic_0001>
module attributes {stable_mosaic.version = 11 : i64} {
  func.func @gru_fused_kernel(%arg0: i32, %arg1: i32, %arg2: memref<1xi32, #tpu.memory_space<smem>>, %arg3: memref<8x1xi32, #tpu.memory_space<vmem>>, %arg4: memref<8x8x16xbf16, #tpu.memory_space<vmem>>, %arg5: memref<16x384xbf16, #tpu.memory_space<vmem>>, %arg6: memref<1x384xf32, #tpu.memory_space<vmem>>, %arg7: memref<128x384xbf16, #tpu.memory_space<vmem>>, %arg8: memref<1x128xf32, #tpu.memory_space<vmem>>, %arg9: memref<128x128xbf16, #tpu.memory_space<vmem>>, %arg10: memref<1x128xf32, #tpu.memory_space<vmem>>, %arg11: memref<8x128xf32, #tpu.memory_space<vmem>>, %arg12: memref<8x128xf32, #tpu.memory_space<vmem>>, %arg13: memref<8x8x384xf32, #tpu.memory_space<vmem>>) attributes {dimension_semantics = [#tpu.dimension_semantics<parallel>, #tpu.dimension_semantics<arbitrary>], iteration_bounds = array<i64: 1, 3>, scalar_prefetch = 1 : i64, scratch_operands = 2 : i64, tpu.core_type = #tpu.core_type<tc>, window_params = [{transform_indices = @transform_0, window_bounds = array<i64: 8, 1>}, {transform_indices = @transform_1, window_bounds = array<i64: 8, 8, 16>}, {pipeline_mode = #tpu.pipeline_mode<synchronous>, transform_indices = @transform_2, window_bounds = array<i64: 16, 384>}, {pipeline_mode = #tpu.pipeline_mode<synchronous>, transform_indices = @transform_3, window_bounds = array<i64: 1, 384>}, {pipeline_mode = #tpu.pipeline_mode<synchronous>, transform_indices = @transform_4, window_bounds = array<i64: 128, 384>}, {pipeline_mode = #tpu.pipeline_mode<synchronous>, transform_indices = @transform_5, window_bounds = array<i64: 1, 128>}, {pipeline_mode = #tpu.pipeline_mode<synchronous>, transform_indices = @transform_6, window_bounds = array<i64: 128, 128>}, {pipeline_mode = #tpu.pipeline_mode<synchronous>, transform_indices = @transform_7, window_bounds = array<i64: 1, 128>}, {transform_indices = @transform_8, window_bounds = array<i64: 8, 128>}]} {
    %c8_i32 = arith.constant 8 : i32
    %0 = arith.muli %arg1, %c8_i32 : i32
    %c0_i32 = arith.constant 0 : i32
    %1 = arith.cmpi eq, %arg1, %c0_i32 : i32
    %2 = arith.extui %1 : i1 to i32
    %c0_i32_0 = arith.constant 0 : i32
    %3 = arith.cmpi ne, %2, %c0_i32_0 : i32
    scf.if %3 {
      %cst = arith.constant 0.000000e+00 : f32
      %11 = vector.broadcast %cst : f32 to vector<8x128xf32>
      %c0_3 = arith.constant 0 : index
      %c0_4 = arith.constant 0 : index
      %12 = vector.load %arg12[%c0_3, %c0_4] : memref<8x128xf32, #tpu.memory_space<vmem>>, vector<8x128xf32>
      tpu.vector_store %arg12[%c0_3, %c0_4], %11 {strides = array<i32>} : memref<8x128xf32, #tpu.memory_space<vmem>>, vector<8x128xf32>,
    } else {
    }
    %c0 = arith.constant 0 : index
    %4 = memref.load %arg2[%c0] : memref<1xi32, #tpu.memory_space<smem>>
    %5 = arith.cmpi slt, %0, %4 : i32
    %6 = arith.extui %5 : i1 to i32
    %c0_i32_1 = arith.constant 0 : i32
    %7 = arith.cmpi ne, %6, %c0_i32_1 : i32
    scf.if %7 {
      %c0_3 = arith.constant 0 : index
      %c0_4 = arith.constant 0 : index
      %11 = vector.load %arg5[%c0_3, %c0_4] : memref<16x384xbf16, #tpu.memory_space<vmem>>, vector<16x384xbf16>
      %c0_5 = arith.constant 0 : index
      %c0_6 = arith.constant 0 : index
      %12 = vector.load %arg6[%c0_5, %c0_6] : memref<1x384xf32, #tpu.memory_space<vmem>>, vector<1x384xf32>
      %c0_7 = arith.constant 0 : index
      %c0_8 = arith.constant 0 : index
      %c0_9 = arith.constant 0 : index
      %13 = vector.load %arg4[%c0_7, %c0_8, %c0_9] : memref<8x8x16xbf16, #tpu.memory_space<vmem>>, vector<1x8x16xbf16>
      %14 = vector.shape_cast %13 : vector<1x8x16xbf16> to vector<8x16xbf16>
      %cst = arith.constant dense<0.000000e+00> : vector<8x384xf32>
      %15 = tpu.matmul %14, %11, %cst {dimension_numbers = #tpu.dot_dimension_numbers<[1], [0], [0], [1], [0, 0, 1, 1], [], []>} : vector<8x16xbf16>, vector<16x384xbf16>, vector<8x384xf32> -> vector<8x384xf32>
      %16 = vector.broadcast %12 : vector<1x384xf32> to vector<8x384xf32>
      %17 = arith.addf %15, %16 : vector<8x384xf32>
      %c0_10 = arith.constant 0 : index
      %c0_11 = arith.constant 0 : index
      %c0_12 = arith.constant 0 : index
      %18 = vector.load %arg13[%c0_10, %c0_11, %c0_12] : memref<8x8x384xf32, #tpu.memory_space<vmem>>, vector<1x8x384xf32>
      %19 = vector.shape_cast %18 : vector<1x8x384xf32> to vector<8x384xf32>
      %20 = vector.shape_cast %17 : vector<8x384xf32> to vector<1x8x384xf32>
      tpu.vector_store %arg13[%c0_10, %c0_11, %c0_12], %20 {strides = array<i32>} : memref<8x8x384xf32, #tpu.memory_space<vmem>>, vector<1x8x384xf32>,
      %c1 = arith.constant 1 : index
      %c0_13 = arith.constant 0 : index
      %c0_14 = arith.constant 0 : index
      %21 = vector.load %arg4[%c1, %c0_13, %c0_14] : memref<8x8x16xbf16, #tpu.memory_space<vmem>>, vector<1x8x16xbf16>
      %22 = vector.shape_cast %21 : vector<1x8x16xbf16> to vector<8x16xbf16>
      %cst_15 = arith.constant dense<0.000000e+00> : vector<8x384xf32>
      %23 = tpu.matmul %22, %11, %cst_15 {dimension_numbers = #tpu.dot_dimension_numbers<[1], [0], [0], [1], [0, 0, 1, 1], [], []>} : vector<8x16xbf16>, vector<16x384xbf16>, vector<8x384xf32> -> vector<8x384xf32>
      %24 = vector.broadcast %12 : vector<1x384xf32> to vector<8x384xf32>
      %25 = arith.addf %23, %24 : vector<8x384xf32>
      %c1_16 = arith.constant 1 : index
      %c0_17 = arith.constant 0 : index
      %c0_18 = arith.constant 0 : index
      %26 = vector.load %arg13[%c1_16, %c0_17, %c0_18] : memref<8x8x384xf32, #tpu.memory_space<vmem>>, vector<1x8x384xf32>
      %27 = vector.shape_cast %26 : vector<1x8x384xf32> to vector<8x384xf32>
      %28 = vector.shape_cast %25 : vector<8x384xf32> to vector<1x8x384xf32>
      tpu.vector_store %arg13[%c1_16, %c0_17, %c0_18], %28 {strides = array<i32>} : memref<8x8x384xf32, #tpu.memory_space<vmem>>, vector<1x8x384xf32>,
      %c2 = arith.constant 2 : index
      %c0_19 = arith.constant 0 : index
      %c0_20 = arith.constant 0 : index
      %29 = vector.load %arg4[%c2, %c0_19, %c0_20] : memref<8x8x16xbf16, #tpu.memory_space<vmem>>, vector<1x8x16xbf16>
      %30 = vector.shape_cast %29 : vector<1x8x16xbf16> to vector<8x16xbf16>
      %cst_21 = arith.constant dense<0.000000e+00> : vector<8x384xf32>
      %31 = tpu.matmul %30, %11, %cst_21 {dimension_numbers = #tpu.dot_dimension_numbers<[1], [0], [0], [1], [0, 0, 1, 1], [], []>} : vector<8x16xbf16>, vector<16x384xbf16>, vector<8x384xf32> -> vector<8x384xf32>
      %32 = vector.broadcast %12 : vector<1x384xf32> to vector<8x384xf32>
      %33 = arith.addf %31, %32 : vector<8x384xf32>
      %c2_22 = arith.constant 2 : index
      %c0_23 = arith.constant 0 : index
      %c0_24 = arith.constant 0 : index
      %34 = vector.load %arg13[%c2_22, %c0_23, %c0_24] : memref<8x8x384xf32, #tpu.memory_space<vmem>>, vector<1x8x384xf32>
      %35 = vector.shape_cast %34 : vector<1x8x384xf32> to vector<8x384xf32>
      %36 = vector.shape_cast %33 : vector<8x384xf32> to vector<1x8x384xf32>
      tpu.vector_store %arg13[%c2_22, %c0_23, %c0_24], %36 {strides = array<i32>} : memref<8x8x384xf32, #tpu.memory_space<vmem>>, vector<1x8x384xf32>,
      %c3 = arith.constant 3 : index
      %c0_25 = arith.constant 0 : index
      %c0_26 = arith.constant 0 : index
      %37 = vector.load %arg4[%c3, %c0_25, %c0_26] : memref<8x8x16xbf16, #tpu.memory_space<vmem>>, vector<1x8x16xbf16>
      %38 = vector.shape_cast %37 : vector<1x8x16xbf16> to vector<8x16xbf16>
      %cst_27 = arith.constant dense<0.000000e+00> : vector<8x384xf32>
      %39 = tpu.matmul %38, %11, %cst_27 {dimension_numbers = #tpu.dot_dimension_numbers<[1], [0], [0], [1], [0, 0, 1, 1], [], []>} : vector<8x16xbf16>, vector<16x384xbf16>, vector<8x384xf32> -> vector<8x384xf32>
      %40 = vector.broadcast %12 : vector<1x384xf32> to vector<8x384xf32>
      %41 = arith.addf %39, %40 : vector<8x384xf32>
      %c3_28 = arith.constant 3 : index
      %c0_29 = arith.constant 0 : index
      %c0_30 = arith.constant 0 : index
      %42 = vector.load %arg13[%c3_28, %c0_29, %c0_30] : memref<8x8x384xf32, #tpu.memory_space<vmem>>, vector<1x8x384xf32>
      %43 = vector.shape_cast %42 : vector<1x8x384xf32> to vector<8x384xf32>
      %44 = vector.shape_cast %41 : vector<8x384xf32> to vector<1x8x384xf32>
      tpu.vector_store %arg13[%c3_28, %c0_29, %c0_30], %44 {strides = array<i32>} : memref<8x8x384xf32, #tpu.memory_space<vmem>>, vector<1x8x384xf32>,
      %c4 = arith.constant 4 : index
      %c0_31 = arith.constant 0 : index
      %c0_32 = arith.constant 0 : index
      %45 = vector.load %arg4[%c4, %c0_31, %c0_32] : memref<8x8x16xbf16, #tpu.memory_space<vmem>>, vector<1x8x16xbf16>
      %46 = vector.shape_cast %45 : vector<1x8x16xbf16> to vector<8x16xbf16>
      %cst_33 = arith.constant dense<0.000000e+00> : vector<8x384xf32>
      %47 = tpu.matmul %46, %11, %cst_33 {dimension_numbers = #tpu.dot_dimension_numbers<[1], [0], [0], [1], [0, 0, 1, 1], [], []>} : vector<8x16xbf16>, vector<16x384xbf16>, vector<8x384xf32> -> vector<8x384xf32>
      %48 = vector.broadcast %12 : vector<1x384xf32> to vector<8x384xf32>
      %49 = arith.addf %47, %48 : vector<8x384xf32>
      %c4_34 = arith.constant 4 : index
      %c0_35 = arith.constant 0 : index
      %c0_36 = arith.constant 0 : index
      %50 = vector.load %arg13[%c4_34, %c0_35, %c0_36] : memref<8x8x384xf32, #tpu.memory_space<vmem>>, vector<1x8x384xf32>
      %51 = vector.shape_cast %50 : vector<1x8x384xf32> to vector<8x384xf32>
      %52 = vector.shape_cast %49 : vector<8x384xf32> to vector<1x8x384xf32>
      tpu.vector_store %arg13[%c4_34, %c0_35, %c0_36], %52 {strides = array<i32>} : memref<8x8x384xf32, #tpu.memory_space<vmem>>, vector<1x8x384xf32>,
      %c5 = arith.constant 5 : index
      %c0_37 = arith.constant 0 : index
      %c0_38 = arith.constant 0 : index
      %53 = vector.load %arg4[%c5, %c0_37, %c0_38] : memref<8x8x16xbf16, #tpu.memory_space<vmem>>, vector<1x8x16xbf16>
      %54 = vector.shape_cast %53 : vector<1x8x16xbf16> to vector<8x16xbf16>
      %cst_39 = arith.constant dense<0.000000e+00> : vector<8x384xf32>
      %55 = tpu.matmul %54, %11, %cst_39 {dimension_numbers = #tpu.dot_dimension_numbers<[1], [0], [0], [1], [0, 0, 1, 1], [], []>} : vector<8x16xbf16>, vector<16x384xbf16>, vector<8x384xf32> -> vector<8x384xf32>
      %56 = vector.broadcast %12 : vector<1x384xf32> to vector<8x384xf32>
      %57 = arith.addf %55, %56 : vector<8x384xf32>
      %c5_40 = arith.constant 5 : index
      %c0_41 = arith.constant 0 : index
      %c0_42 = arith.constant 0 : index
      %58 = vector.load %arg13[%c5_40, %c0_41, %c0_42] : memref<8x8x384xf32, #tpu.memory_space<vmem>>, vector<1x8x384xf32>
      %59 = vector.shape_cast %58 : vector<1x8x384xf32> to vector<8x384xf32>
      %60 = vector.shape_cast %57 : vector<8x384xf32> to vector<1x8x384xf32>
      tpu.vector_store %arg13[%c5_40, %c0_41, %c0_42], %60 {strides = array<i32>} : memref<8x8x384xf32, #tpu.memory_space<vmem>>, vector<1x8x384xf32>,
      %c6 = arith.constant 6 : index
      %c0_43 = arith.constant 0 : index
      %c0_44 = arith.constant 0 : index
      %61 = vector.load %arg4[%c6, %c0_43, %c0_44] : memref<8x8x16xbf16, #tpu.memory_space<vmem>>, vector<1x8x16xbf16>
      %62 = vector.shape_cast %61 : vector<1x8x16xbf16> to vector<8x16xbf16>
      %cst_45 = arith.constant dense<0.000000e+00> : vector<8x384xf32>
      %63 = tpu.matmul %62, %11, %cst_45 {dimension_numbers = #tpu.dot_dimension_numbers<[1], [0], [0], [1], [0, 0, 1, 1], [], []>} : vector<8x16xbf16>, vector<16x384xbf16>, vector<8x384xf32> -> vector<8x384xf32>
      %64 = vector.broadcast %12 : vector<1x384xf32> to vector<8x384xf32>
      %65 = arith.addf %63, %64 : vector<8x384xf32>
      %c6_46 = arith.constant 6 : index
      %c0_47 = arith.constant 0 : index
      %c0_48 = arith.constant 0 : index
      %66 = vector.load %arg13[%c6_46, %c0_47, %c0_48] : memref<8x8x384xf32, #tpu.memory_space<vmem>>, vector<1x8x384xf32>
      %67 = vector.shape_cast %66 : vector<1x8x384xf32> to vector<8x384xf32>
      %68 = vector.shape_cast %65 : vector<8x384xf32> to vector<1x8x384xf32>
      tpu.vector_store %arg13[%c6_46, %c0_47, %c0_48], %68 {strides = array<i32>} : memref<8x8x384xf32, #tpu.memory_space<vmem>>, vector<1x8x384xf32>,
      %c7 = arith.constant 7 : index
      %c0_49 = arith.constant 0 : index
      %c0_50 = arith.constant 0 : index
      %69 = vector.load %arg4[%c7, %c0_49, %c0_50] : memref<8x8x16xbf16, #tpu.memory_space<vmem>>, vector<1x8x16xbf16>
      %70 = vector.shape_cast %69 : vector<1x8x16xbf16> to vector<8x16xbf16>
      %cst_51 = arith.constant dense<0.000000e+00> : vector<8x384xf32>
      %71 = tpu.matmul %70, %11, %cst_51 {dimension_numbers = #tpu.dot_dimension_numbers<[1], [0], [0], [1], [0, 0, 1, 1], [], []>} : vector<8x16xbf16>, vector<16x384xbf16>, vector<8x384xf32> -> vector<8x384xf32>
      %72 = vector.broadcast %12 : vector<1x384xf32> to vector<8x384xf32>
      %73 = arith.addf %71, %72 : vector<8x384xf32>
      %c7_52 = arith.constant 7 : index
      %c0_53 = arith.constant 0 : index
      %c0_54 = arith.constant 0 : index
      %74 = vector.load %arg13[%c7_52, %c0_53, %c0_54] : memref<8x8x384xf32, #tpu.memory_space<vmem>>, vector<1x8x384xf32>
      %75 = vector.shape_cast %74 : vector<1x8x384xf32> to vector<8x384xf32>
      %76 = vector.shape_cast %73 : vector<8x384xf32> to vector<1x8x384xf32>
      tpu.vector_store %arg13[%c7_52, %c0_53, %c0_54], %76 {strides = array<i32>} : memref<8x8x384xf32, #tpu.memory_space<vmem>>, vector<1x8x384xf32>,
      %c0_55 = arith.constant 0 : index
      %c0_56 = arith.constant 0 : index
      %77 = vector.load %arg3[%c0_55, %c0_56] : memref<8x1xi32, #tpu.memory_space<vmem>>, vector<8x1xi32>
      %c0_57 = arith.constant 0 : index
      %c0_58 = arith.constant 0 : index
      %78 = vector.load %arg7[%c0_57, %c0_58] : memref<128x384xbf16, #tpu.memory_space<vmem>>, vector<128x384xbf16>
      %c0_59 = arith.constant 0 : index
      %c0_60 = arith.constant 0 : index
      %79 = vector.load %arg8[%c0_59, %c0_60] : memref<1x128xf32, #tpu.memory_space<vmem>>, vector<1x128xf32>
      %80 = vector.shape_cast %79 : vector<1x128xf32> to vector<1x128xf32>
      %81 = vector.broadcast %80 : vector<1x128xf32> to vector<8x128xf32>
      %c0_61 = arith.constant 0 : index
      %c0_62 = arith.constant 0 : index
      %82 = vector.load %arg12[%c0_61, %c0_62] : memref<8x128xf32, #tpu.memory_space<vmem>>, vector<8x128xf32>
      %c0_i32_63 = arith.constant 0 : i32
      %83 = arith.index_cast %c0_i32_63 : i32 to index
      %c0_64 = arith.constant 0 : index
      %c0_65 = arith.constant 0 : index
      %84 = vector.load %arg13[%83, %c0_64, %c0_65] : memref<8x8x384xf32, #tpu.memory_space<vmem>>, vector<1x8x384xf32>
      %85 = vector.shape_cast %84 : vector<1x8x384xf32> to vector<8x384xf32>
      %86 = arith.truncf %82 : vector<8x128xf32> to vector<8x128xbf16>
      %cst_66 = arith.constant dense<0.000000e+00> : vector<8x384xf32>
      %87 = tpu.matmul %86, %78, %cst_66 {dimension_numbers = #tpu.dot_dimension_numbers<[1], [0], [0], [1], [0, 0, 1, 1], [], []>} : vector<8x128xbf16>, vector<128x384xbf16>, vector<8x384xf32> -> vector<8x384xf32>
      %88 = vector.extract_strided_slice %85 {offsets = [0, 0], sizes = [8, 128], strides = [1, 1]} : vector<8x384xf32> to vector<8x128xf32>
      %89 = vector.extract_strided_slice %87 {offsets = [0, 0], sizes = [8, 128], strides = [1, 1]} : vector<8x384xf32> to vector<8x128xf32>
      %90 = arith.addf %88, %89 : vector<8x128xf32>
      %91 = arith.negf %90 : vector<8x128xf32>
      %92 = math.exp %91 : vector<8x128xf32>
      %cst_67 = arith.constant 1.000000e+00 : f32
      %93 = vector.broadcast %cst_67 : f32 to vector<8x128xf32>
      %94 = arith.addf %93, %92 : vector<8x128xf32>
      %95 = arith.divf %93, %94 : vector<8x128xf32>
      %96 = vector.extract_strided_slice %85 {offsets = [0, 128], sizes = [8, 128], strides = [1, 1]} : vector<8x384xf32> to vector<8x128xf32>
      %97 = vector.extract_strided_slice %87 {offsets = [0, 128], sizes = [8, 128], strides = [1, 1]} : vector<8x384xf32> to vector<8x128xf32>
      %98 = arith.addf %96, %97 : vector<8x128xf32>
      %99 = arith.negf %98 : vector<8x128xf32>
      %100 = math.exp %99 : vector<8x128xf32>
      %cst_68 = arith.constant 1.000000e+00 : f32
      %101 = vector.broadcast %cst_68 : f32 to vector<8x128xf32>
      %102 = arith.addf %101, %100 : vector<8x128xf32>
      %103 = arith.divf %101, %102 : vector<8x128xf32>
      %104 = vector.extract_strided_slice %85 {offsets = [0, 256], sizes = [8, 128], strides = [1, 1]} : vector<8x384xf32> to vector<8x128xf32>
      %105 = vector.extract_strided_slice %87 {offsets = [0, 256], sizes = [8, 128], strides = [1, 1]} : vector<8x384xf32> to vector<8x128xf32>
      %106 = arith.addf %105, %81 : vector<8x128xf32>
      %107 = arith.mulf %95, %106 : vector<8x128xf32>
      %108 = arith.addf %104, %107 : vector<8x128xf32>
      %109 = math.tanh %108 : vector<8x128xf32>
      %cst_69 = arith.constant 1.000000e+00 : f32
      %110 = vector.broadcast %cst_69 : f32 to vector<8x128xf32>
      %111 = arith.subf %110, %103 : vector<8x128xf32>
      %112 = arith.mulf %111, %109 : vector<8x128xf32>
      %113 = arith.mulf %103, %82 : vector<8x128xf32>
      %114 = arith.addf %112, %113 : vector<8x128xf32>
      %115 = arith.addi %0, %c0_i32_63 : i32
      %116 = vector.broadcast %115 : i32 to vector<8x1xi32>
      %117 = arith.cmpi sgt, %77, %116 : vector<8x1xi32>
      %118 = vector.shape_cast %117 : vector<8x1xi1> to vector<8x1xi1>
      %119 = vector.broadcast %118 : vector<8x1xi1> to vector<8x128xi1>
      %120 = arith.select %119, %114, %82 : vector<8x128xi1>, vector<8x128xf32>
      %c1_i32 = arith.constant 1 : i32
      %121 = arith.index_cast %c1_i32 : i32 to index
      %c0_70 = arith.constant 0 : index
      %c0_71 = arith.constant 0 : index
      %122 = vector.load %arg13[%121, %c0_70, %c0_71] : memref<8x8x384xf32, #tpu.memory_space<vmem>>, vector<1x8x384xf32>
      %123 = vector.shape_cast %122 : vector<1x8x384xf32> to vector<8x384xf32>
      %124 = arith.truncf %120 : vector<8x128xf32> to vector<8x128xbf16>
      %cst_72 = arith.constant dense<0.000000e+00> : vector<8x384xf32>
      %125 = tpu.matmul %124, %78, %cst_72 {dimension_numbers = #tpu.dot_dimension_numbers<[1], [0], [0], [1], [0, 0, 1, 1], [], []>} : vector<8x128xbf16>, vector<128x384xbf16>, vector<8x384xf32> -> vector<8x384xf32>
      %126 = vector.extract_strided_slice %123 {offsets = [0, 0], sizes = [8, 128], strides = [1, 1]} : vector<8x384xf32> to vector<8x128xf32>
      %127 = vector.extract_strided_slice %125 {offsets = [0, 0], sizes = [8, 128], strides = [1, 1]} : vector<8x384xf32> to vector<8x128xf32>
      %128 = arith.addf %126, %127 : vector<8x128xf32>
      %129 = arith.negf %128 : vector<8x128xf32>
      %130 = math.exp %129 : vector<8x128xf32>
      %cst_73 = arith.constant 1.000000e+00 : f32
      %131 = vector.broadcast %cst_73 : f32 to vector<8x128xf32>
      %132 = arith.addf %131, %130 : vector<8x128xf32>
      %133 = arith.divf %131, %132 : vector<8x128xf32>
      %134 = vector.extract_strided_slice %123 {offsets = [0, 128], sizes = [8, 128], strides = [1, 1]} : vector<8x384xf32> to vector<8x128xf32>
      %135 = vector.extract_strided_slice %125 {offsets = [0, 128], sizes = [8, 128], strides = [1, 1]} : vector<8x384xf32> to vector<8x128xf32>
      %136 = arith.addf %134, %135 : vector<8x128xf32>
      %137 = arith.negf %136 : vector<8x128xf32>
      %138 = math.exp %137 : vector<8x128xf32>
      %cst_74 = arith.constant 1.000000e+00 : f32
      %139 = vector.broadcast %cst_74 : f32 to vector<8x128xf32>
      %140 = arith.addf %139, %138 : vector<8x128xf32>
      %141 = arith.divf %139, %140 : vector<8x128xf32>
      %142 = vector.extract_strided_slice %123 {offsets = [0, 256], sizes = [8, 128], strides = [1, 1]} : vector<8x384xf32> to vector<8x128xf32>
      %143 = vector.extract_strided_slice %125 {offsets = [0, 256], sizes = [8, 128], strides = [1, 1]} : vector<8x384xf32> to vector<8x128xf32>
      %144 = arith.addf %143, %81 : vector<8x128xf32>
      %145 = arith.mulf %133, %144 : vector<8x128xf32>
      %146 = arith.addf %142, %145 : vector<8x128xf32>
      %147 = math.tanh %146 : vector<8x128xf32>
      %cst_75 = arith.constant 1.000000e+00 : f32
      %148 = vector.broadcast %cst_75 : f32 to vector<8x128xf32>
      %149 = arith.subf %148, %141 : vector<8x128xf32>
      %150 = arith.mulf %149, %147 : vector<8x128xf32>
      %151 = arith.mulf %141, %120 : vector<8x128xf32>
      %152 = arith.addf %150, %151 : vector<8x128xf32>
      %153 = arith.addi %0, %c1_i32 : i32
      %154 = vector.broadcast %153 : i32 to vector<8x1xi32>
      %155 = arith.cmpi sgt, %77, %154 : vector<8x1xi32>
      %156 = vector.shape_cast %155 : vector<8x1xi1> to vector<8x1xi1>
      %157 = vector.broadcast %156 : vector<8x1xi1> to vector<8x128xi1>
      %158 = arith.select %157, %152, %120 : vector<8x128xi1>, vector<8x128xf32>
      %c2_i32_76 = arith.constant 2 : i32
      %159 = arith.index_cast %c2_i32_76 : i32 to index
      %c0_77 = arith.constant 0 : index
      %c0_78 = arith.constant 0 : index
      %160 = vector.load %arg13[%159, %c0_77, %c0_78] : memref<8x8x384xf32, #tpu.memory_space<vmem>>, vector<1x8x384xf32>
      %161 = vector.shape_cast %160 : vector<1x8x384xf32> to vector<8x384xf32>
      %162 = arith.truncf %158 : vector<8x128xf32> to vector<8x128xbf16>
      %cst_79 = arith.constant dense<0.000000e+00> : vector<8x384xf32>
      %163 = tpu.matmul %162, %78, %cst_79 {dimension_numbers = #tpu.dot_dimension_numbers<[1], [0], [0], [1], [0, 0, 1, 1], [], []>} : vector<8x128xbf16>, vector<128x384xbf16>, vector<8x384xf32> -> vector<8x384xf32>
      %164 = vector.extract_strided_slice %161 {offsets = [0, 0], sizes = [8, 128], strides = [1, 1]} : vector<8x384xf32> to vector<8x128xf32>
      %165 = vector.extract_strided_slice %163 {offsets = [0, 0], sizes = [8, 128], strides = [1, 1]} : vector<8x384xf32> to vector<8x128xf32>
      %166 = arith.addf %164, %165 : vector<8x128xf32>
      %167 = arith.negf %166 : vector<8x128xf32>
      %168 = math.exp %167 : vector<8x128xf32>
      %cst_80 = arith.constant 1.000000e+00 : f32
      %169 = vector.broadcast %cst_80 : f32 to vector<8x128xf32>
      %170 = arith.addf %169, %168 : vector<8x128xf32>
      %171 = arith.divf %169, %170 : vector<8x128xf32>
      %172 = vector.extract_strided_slice %161 {offsets = [0, 128], sizes = [8, 128], strides = [1, 1]} : vector<8x384xf32> to vector<8x128xf32>
      %173 = vector.extract_strided_slice %163 {offsets = [0, 128], sizes = [8, 128], strides = [1, 1]} : vector<8x384xf32> to vector<8x128xf32>
      %174 = arith.addf %172, %173 : vector<8x128xf32>
      %175 = arith.negf %174 : vector<8x128xf32>
      %176 = math.exp %175 : vector<8x128xf32>
      %cst_81 = arith.constant 1.000000e+00 : f32
      %177 = vector.broadcast %cst_81 : f32 to vector<8x128xf32>
      %178 = arith.addf %177, %176 : vector<8x128xf32>
      %179 = arith.divf %177, %178 : vector<8x128xf32>
      %180 = vector.extract_strided_slice %161 {offsets = [0, 256], sizes = [8, 128], strides = [1, 1]} : vector<8x384xf32> to vector<8x128xf32>
      %181 = vector.extract_strided_slice %163 {offsets = [0, 256], sizes = [8, 128], strides = [1, 1]} : vector<8x384xf32> to vector<8x128xf32>
      %182 = arith.addf %181, %81 : vector<8x128xf32>
      %183 = arith.mulf %171, %182 : vector<8x128xf32>
      %184 = arith.addf %180, %183 : vector<8x128xf32>
      %185 = math.tanh %184 : vector<8x128xf32>
      %cst_82 = arith.constant 1.000000e+00 : f32
      %186 = vector.broadcast %cst_82 : f32 to vector<8x128xf32>
      %187 = arith.subf %186, %179 : vector<8x128xf32>
      %188 = arith.mulf %187, %185 : vector<8x128xf32>
      %189 = arith.mulf %179, %158 : vector<8x128xf32>
      %190 = arith.addf %188, %189 : vector<8x128xf32>
      %191 = arith.addi %0, %c2_i32_76 : i32
      %192 = vector.broadcast %191 : i32 to vector<8x1xi32>
      %193 = arith.cmpi sgt, %77, %192 : vector<8x1xi32>
      %194 = vector.shape_cast %193 : vector<8x1xi1> to vector<8x1xi1>
      %195 = vector.broadcast %194 : vector<8x1xi1> to vector<8x128xi1>
      %196 = arith.select %195, %190, %158 : vector<8x128xi1>, vector<8x128xf32>
      %c3_i32 = arith.constant 3 : i32
      %197 = arith.index_cast %c3_i32 : i32 to index
      %c0_83 = arith.constant 0 : index
      %c0_84 = arith.constant 0 : index
      %198 = vector.load %arg13[%197, %c0_83, %c0_84] : memref<8x8x384xf32, #tpu.memory_space<vmem>>, vector<1x8x384xf32>
      %199 = vector.shape_cast %198 : vector<1x8x384xf32> to vector<8x384xf32>
      %200 = arith.truncf %196 : vector<8x128xf32> to vector<8x128xbf16>
      %cst_85 = arith.constant dense<0.000000e+00> : vector<8x384xf32>
      %201 = tpu.matmul %200, %78, %cst_85 {dimension_numbers = #tpu.dot_dimension_numbers<[1], [0], [0], [1], [0, 0, 1, 1], [], []>} : vector<8x128xbf16>, vector<128x384xbf16>, vector<8x384xf32> -> vector<8x384xf32>
      %202 = vector.extract_strided_slice %199 {offsets = [0, 0], sizes = [8, 128], strides = [1, 1]} : vector<8x384xf32> to vector<8x128xf32>
      %203 = vector.extract_strided_slice %201 {offsets = [0, 0], sizes = [8, 128], strides = [1, 1]} : vector<8x384xf32> to vector<8x128xf32>
      %204 = arith.addf %202, %203 : vector<8x128xf32>
      %205 = arith.negf %204 : vector<8x128xf32>
      %206 = math.exp %205 : vector<8x128xf32>
      %cst_86 = arith.constant 1.000000e+00 : f32
      %207 = vector.broadcast %cst_86 : f32 to vector<8x128xf32>
      %208 = arith.addf %207, %206 : vector<8x128xf32>
      %209 = arith.divf %207, %208 : vector<8x128xf32>
      %210 = vector.extract_strided_slice %199 {offsets = [0, 128], sizes = [8, 128], strides = [1, 1]} : vector<8x384xf32> to vector<8x128xf32>
      %211 = vector.extract_strided_slice %201 {offsets = [0, 128], sizes = [8, 128], strides = [1, 1]} : vector<8x384xf32> to vector<8x128xf32>
      %212 = arith.addf %210, %211 : vector<8x128xf32>
      %213 = arith.negf %212 : vector<8x128xf32>
      %214 = math.exp %213 : vector<8x128xf32>
      %cst_87 = arith.constant 1.000000e+00 : f32
      %215 = vector.broadcast %cst_87 : f32 to vector<8x128xf32>
      %216 = arith.addf %215, %214 : vector<8x128xf32>
      %217 = arith.divf %215, %216 : vector<8x128xf32>
      %218 = vector.extract_strided_slice %199 {offsets = [0, 256], sizes = [8, 128], strides = [1, 1]} : vector<8x384xf32> to vector<8x128xf32>
      %219 = vector.extract_strided_slice %201 {offsets = [0, 256], sizes = [8, 128], strides = [1, 1]} : vector<8x384xf32> to vector<8x128xf32>
      %220 = arith.addf %219, %81 : vector<8x128xf32>
      %221 = arith.mulf %209, %220 : vector<8x128xf32>
      %222 = arith.addf %218, %221 : vector<8x128xf32>
      %223 = math.tanh %222 : vector<8x128xf32>
      %cst_88 = arith.constant 1.000000e+00 : f32
      %224 = vector.broadcast %cst_88 : f32 to vector<8x128xf32>
      %225 = arith.subf %224, %217 : vector<8x128xf32>
      %226 = arith.mulf %225, %223 : vector<8x128xf32>
      %227 = arith.mulf %217, %196 : vector<8x128xf32>
      %228 = arith.addf %226, %227 : vector<8x128xf32>
      %229 = arith.addi %0, %c3_i32 : i32
      %230 = vector.broadcast %229 : i32 to vector<8x1xi32>
      %231 = arith.cmpi sgt, %77, %230 : vector<8x1xi32>
      %232 = vector.shape_cast %231 : vector<8x1xi1> to vector<8x1xi1>
      %233 = vector.broadcast %232 : vector<8x1xi1> to vector<8x128xi1>
      %234 = arith.select %233, %228, %196 : vector<8x128xi1>, vector<8x128xf32>
      %c4_i32 = arith.constant 4 : i32
      %235 = arith.index_cast %c4_i32 : i32 to index
      %c0_89 = arith.constant 0 : index
      %c0_90 = arith.constant 0 : index
      %236 = vector.load %arg13[%235, %c0_89, %c0_90] : memref<8x8x384xf32, #tpu.memory_space<vmem>>, vector<1x8x384xf32>
      %237 = vector.shape_cast %236 : vector<1x8x384xf32> to vector<8x384xf32>
      %238 = arith.truncf %234 : vector<8x128xf32> to vector<8x128xbf16>
      %cst_91 = arith.constant dense<0.000000e+00> : vector<8x384xf32>
      %239 = tpu.matmul %238, %78, %cst_91 {dimension_numbers = #tpu.dot_dimension_numbers<[1], [0], [0], [1], [0, 0, 1, 1], [], []>} : vector<8x128xbf16>, vector<128x384xbf16>, vector<8x384xf32> -> vector<8x384xf32>
      %240 = vector.extract_strided_slice %237 {offsets = [0, 0], sizes = [8, 128], strides = [1, 1]} : vector<8x384xf32> to vector<8x128xf32>
      %241 = vector.extract_strided_slice %239 {offsets = [0, 0], sizes = [8, 128], strides = [1, 1]} : vector<8x384xf32> to vector<8x128xf32>
      %242 = arith.addf %240, %241 : vector<8x128xf32>
      %243 = arith.negf %242 : vector<8x128xf32>
      %244 = math.exp %243 : vector<8x128xf32>
      %cst_92 = arith.constant 1.000000e+00 : f32
      %245 = vector.broadcast %cst_92 : f32 to vector<8x128xf32>
      %246 = arith.addf %245, %244 : vector<8x128xf32>
      %247 = arith.divf %245, %246 : vector<8x128xf32>
      %248 = vector.extract_strided_slice %237 {offsets = [0, 128], sizes = [8, 128], strides = [1, 1]} : vector<8x384xf32> to vector<8x128xf32>
      %249 = vector.extract_strided_slice %239 {offsets = [0, 128], sizes = [8, 128], strides = [1, 1]} : vector<8x384xf32> to vector<8x128xf32>
      %250 = arith.addf %248, %249 : vector<8x128xf32>
      %251 = arith.negf %250 : vector<8x128xf32>
      %252 = math.exp %251 : vector<8x128xf32>
      %cst_93 = arith.constant 1.000000e+00 : f32
      %253 = vector.broadcast %cst_93 : f32 to vector<8x128xf32>
      %254 = arith.addf %253, %252 : vector<8x128xf32>
      %255 = arith.divf %253, %254 : vector<8x128xf32>
      %256 = vector.extract_strided_slice %237 {offsets = [0, 256], sizes = [8, 128], strides = [1, 1]} : vector<8x384xf32> to vector<8x128xf32>
      %257 = vector.extract_strided_slice %239 {offsets = [0, 256], sizes = [8, 128], strides = [1, 1]} : vector<8x384xf32> to vector<8x128xf32>
      %258 = arith.addf %257, %81 : vector<8x128xf32>
      %259 = arith.mulf %247, %258 : vector<8x128xf32>
      %260 = arith.addf %256, %259 : vector<8x128xf32>
      %261 = math.tanh %260 : vector<8x128xf32>
      %cst_94 = arith.constant 1.000000e+00 : f32
      %262 = vector.broadcast %cst_94 : f32 to vector<8x128xf32>
      %263 = arith.subf %262, %255 : vector<8x128xf32>
      %264 = arith.mulf %263, %261 : vector<8x128xf32>
      %265 = arith.mulf %255, %234 : vector<8x128xf32>
      %266 = arith.addf %264, %265 : vector<8x128xf32>
      %267 = arith.addi %0, %c4_i32 : i32
      %268 = vector.broadcast %267 : i32 to vector<8x1xi32>
      %269 = arith.cmpi sgt, %77, %268 : vector<8x1xi32>
      %270 = vector.shape_cast %269 : vector<8x1xi1> to vector<8x1xi1>
      %271 = vector.broadcast %270 : vector<8x1xi1> to vector<8x128xi1>
      %272 = arith.select %271, %266, %234 : vector<8x128xi1>, vector<8x128xf32>
      %c5_i32 = arith.constant 5 : i32
      %273 = arith.index_cast %c5_i32 : i32 to index
      %c0_95 = arith.constant 0 : index
      %c0_96 = arith.constant 0 : index
      %274 = vector.load %arg13[%273, %c0_95, %c0_96] : memref<8x8x384xf32, #tpu.memory_space<vmem>>, vector<1x8x384xf32>
      %275 = vector.shape_cast %274 : vector<1x8x384xf32> to vector<8x384xf32>
      %276 = arith.truncf %272 : vector<8x128xf32> to vector<8x128xbf16>
      %cst_97 = arith.constant dense<0.000000e+00> : vector<8x384xf32>
      %277 = tpu.matmul %276, %78, %cst_97 {dimension_numbers = #tpu.dot_dimension_numbers<[1], [0], [0], [1], [0, 0, 1, 1], [], []>} : vector<8x128xbf16>, vector<128x384xbf16>, vector<8x384xf32> -> vector<8x384xf32>
      %278 = vector.extract_strided_slice %275 {offsets = [0, 0], sizes = [8, 128], strides = [1, 1]} : vector<8x384xf32> to vector<8x128xf32>
      %279 = vector.extract_strided_slice %277 {offsets = [0, 0], sizes = [8, 128], strides = [1, 1]} : vector<8x384xf32> to vector<8x128xf32>
      %280 = arith.addf %278, %279 : vector<8x128xf32>
      %281 = arith.negf %280 : vector<8x128xf32>
      %282 = math.exp %281 : vector<8x128xf32>
      %cst_98 = arith.constant 1.000000e+00 : f32
      %283 = vector.broadcast %cst_98 : f32 to vector<8x128xf32>
      %284 = arith.addf %283, %282 : vector<8x128xf32>
      %285 = arith.divf %283, %284 : vector<8x128xf32>
      %286 = vector.extract_strided_slice %275 {offsets = [0, 128], sizes = [8, 128], strides = [1, 1]} : vector<8x384xf32> to vector<8x128xf32>
      %287 = vector.extract_strided_slice %277 {offsets = [0, 128], sizes = [8, 128], strides = [1, 1]} : vector<8x384xf32> to vector<8x128xf32>
      %288 = arith.addf %286, %287 : vector<8x128xf32>
      %289 = arith.negf %288 : vector<8x128xf32>
      %290 = math.exp %289 : vector<8x128xf32>
      %cst_99 = arith.constant 1.000000e+00 : f32
      %291 = vector.broadcast %cst_99 : f32 to vector<8x128xf32>
      %292 = arith.addf %291, %290 : vector<8x128xf32>
      %293 = arith.divf %291, %292 : vector<8x128xf32>
      %294 = vector.extract_strided_slice %275 {offsets = [0, 256], sizes = [8, 128], strides = [1, 1]} : vector<8x384xf32> to vector<8x128xf32>
      %295 = vector.extract_strided_slice %277 {offsets = [0, 256], sizes = [8, 128], strides = [1, 1]} : vector<8x384xf32> to vector<8x128xf32>
      %296 = arith.addf %295, %81 : vector<8x128xf32>
      %297 = arith.mulf %285, %296 : vector<8x128xf32>
      %298 = arith.addf %294, %297 : vector<8x128xf32>
      %299 = math.tanh %298 : vector<8x128xf32>
      %cst_100 = arith.constant 1.000000e+00 : f32
      %300 = vector.broadcast %cst_100 : f32 to vector<8x128xf32>
      %301 = arith.subf %300, %293 : vector<8x128xf32>
      %302 = arith.mulf %301, %299 : vector<8x128xf32>
      %303 = arith.mulf %293, %272 : vector<8x128xf32>
      %304 = arith.addf %302, %303 : vector<8x128xf32>
      %305 = arith.addi %0, %c5_i32 : i32
      %306 = vector.broadcast %305 : i32 to vector<8x1xi32>
      %307 = arith.cmpi sgt, %77, %306 : vector<8x1xi32>
      %308 = vector.shape_cast %307 : vector<8x1xi1> to vector<8x1xi1>
      %309 = vector.broadcast %308 : vector<8x1xi1> to vector<8x128xi1>
      %310 = arith.select %309, %304, %272 : vector<8x128xi1>, vector<8x128xf32>
      %c6_i32 = arith.constant 6 : i32
      %311 = arith.index_cast %c6_i32 : i32 to index
      %c0_101 = arith.constant 0 : index
      %c0_102 = arith.constant 0 : index
      %312 = vector.load %arg13[%311, %c0_101, %c0_102] : memref<8x8x384xf32, #tpu.memory_space<vmem>>, vector<1x8x384xf32>
      %313 = vector.shape_cast %312 : vector<1x8x384xf32> to vector<8x384xf32>
      %314 = arith.truncf %310 : vector<8x128xf32> to vector<8x128xbf16>
      %cst_103 = arith.constant dense<0.000000e+00> : vector<8x384xf32>
      %315 = tpu.matmul %314, %78, %cst_103 {dimension_numbers = #tpu.dot_dimension_numbers<[1], [0], [0], [1], [0, 0, 1, 1], [], []>} : vector<8x128xbf16>, vector<128x384xbf16>, vector<8x384xf32> -> vector<8x384xf32>
      %316 = vector.extract_strided_slice %313 {offsets = [0, 0], sizes = [8, 128], strides = [1, 1]} : vector<8x384xf32> to vector<8x128xf32>
      %317 = vector.extract_strided_slice %315 {offsets = [0, 0], sizes = [8, 128], strides = [1, 1]} : vector<8x384xf32> to vector<8x128xf32>
      %318 = arith.addf %316, %317 : vector<8x128xf32>
      %319 = arith.negf %318 : vector<8x128xf32>
      %320 = math.exp %319 : vector<8x128xf32>
      %cst_104 = arith.constant 1.000000e+00 : f32
      %321 = vector.broadcast %cst_104 : f32 to vector<8x128xf32>
      %322 = arith.addf %321, %320 : vector<8x128xf32>
      %323 = arith.divf %321, %322 : vector<8x128xf32>
      %324 = vector.extract_strided_slice %313 {offsets = [0, 128], sizes = [8, 128], strides = [1, 1]} : vector<8x384xf32> to vector<8x128xf32>
      %325 = vector.extract_strided_slice %315 {offsets = [0, 128], sizes = [8, 128], strides = [1, 1]} : vector<8x384xf32> to vector<8x128xf32>
      %326 = arith.addf %324, %325 : vector<8x128xf32>
      %327 = arith.negf %326 : vector<8x128xf32>
      %328 = math.exp %327 : vector<8x128xf32>
      %cst_105 = arith.constant 1.000000e+00 : f32
      %329 = vector.broadcast %cst_105 : f32 to vector<8x128xf32>
      %330 = arith.addf %329, %328 : vector<8x128xf32>
      %331 = arith.divf %329, %330 : vector<8x128xf32>
      %332 = vector.extract_strided_slice %313 {offsets = [0, 256], sizes = [8, 128], strides = [1, 1]} : vector<8x384xf32> to vector<8x128xf32>
      %333 = vector.extract_strided_slice %315 {offsets = [0, 256], sizes = [8, 128], strides = [1, 1]} : vector<8x384xf32> to vector<8x128xf32>
      %334 = arith.addf %333, %81 : vector<8x128xf32>
      %335 = arith.mulf %323, %334 : vector<8x128xf32>
      %336 = arith.addf %332, %335 : vector<8x128xf32>
      %337 = math.tanh %336 : vector<8x128xf32>
      %cst_106 = arith.constant 1.000000e+00 : f32
      %338 = vector.broadcast %cst_106 : f32 to vector<8x128xf32>
      %339 = arith.subf %338, %331 : vector<8x128xf32>
      %340 = arith.mulf %339, %337 : vector<8x128xf32>
      %341 = arith.mulf %331, %310 : vector<8x128xf32>
      %342 = arith.addf %340, %341 : vector<8x128xf32>
      %343 = arith.addi %0, %c6_i32 : i32
      %344 = vector.broadcast %343 : i32 to vector<8x1xi32>
      %345 = arith.cmpi sgt, %77, %344 : vector<8x1xi32>
      %346 = vector.shape_cast %345 : vector<8x1xi1> to vector<8x1xi1>
      %347 = vector.broadcast %346 : vector<8x1xi1> to vector<8x128xi1>
      %348 = arith.select %347, %342, %310 : vector<8x128xi1>, vector<8x128xf32>
      %c7_i32 = arith.constant 7 : i32
      %349 = arith.index_cast %c7_i32 : i32 to index
      %c0_107 = arith.constant 0 : index
      %c0_108 = arith.constant 0 : index
      %350 = vector.load %arg13[%349, %c0_107, %c0_108] : memref<8x8x384xf32, #tpu.memory_space<vmem>>, vector<1x8x384xf32>
      %351 = vector.shape_cast %350 : vector<1x8x384xf32> to vector<8x384xf32>
      %352 = arith.truncf %348 : vector<8x128xf32> to vector<8x128xbf16>
      %cst_109 = arith.constant dense<0.000000e+00> : vector<8x384xf32>
      %353 = tpu.matmul %352, %78, %cst_109 {dimension_numbers = #tpu.dot_dimension_numbers<[1], [0], [0], [1], [0, 0, 1, 1], [], []>} : vector<8x128xbf16>, vector<128x384xbf16>, vector<8x384xf32> -> vector<8x384xf32>
      %354 = vector.extract_strided_slice %351 {offsets = [0, 0], sizes = [8, 128], strides = [1, 1]} : vector<8x384xf32> to vector<8x128xf32>
      %355 = vector.extract_strided_slice %353 {offsets = [0, 0], sizes = [8, 128], strides = [1, 1]} : vector<8x384xf32> to vector<8x128xf32>
      %356 = arith.addf %354, %355 : vector<8x128xf32>
      %357 = arith.negf %356 : vector<8x128xf32>
      %358 = math.exp %357 : vector<8x128xf32>
      %cst_110 = arith.constant 1.000000e+00 : f32
      %359 = vector.broadcast %cst_110 : f32 to vector<8x128xf32>
      %360 = arith.addf %359, %358 : vector<8x128xf32>
      %361 = arith.divf %359, %360 : vector<8x128xf32>
      %362 = vector.extract_strided_slice %351 {offsets = [0, 128], sizes = [8, 128], strides = [1, 1]} : vector<8x384xf32> to vector<8x128xf32>
      %363 = vector.extract_strided_slice %353 {offsets = [0, 128], sizes = [8, 128], strides = [1, 1]} : vector<8x384xf32> to vector<8x128xf32>
      %364 = arith.addf %362, %363 : vector<8x128xf32>
      %365 = arith.negf %364 : vector<8x128xf32>
      %366 = math.exp %365 : vector<8x128xf32>
      %cst_111 = arith.constant 1.000000e+00 : f32
      %367 = vector.broadcast %cst_111 : f32 to vector<8x128xf32>
      %368 = arith.addf %367, %366 : vector<8x128xf32>
      %369 = arith.divf %367, %368 : vector<8x128xf32>
      %370 = vector.extract_strided_slice %351 {offsets = [0, 256], sizes = [8, 128], strides = [1, 1]} : vector<8x384xf32> to vector<8x128xf32>
      %371 = vector.extract_strided_slice %353 {offsets = [0, 256], sizes = [8, 128], strides = [1, 1]} : vector<8x384xf32> to vector<8x128xf32>
      %372 = arith.addf %371, %81 : vector<8x128xf32>
      %373 = arith.mulf %361, %372 : vector<8x128xf32>
      %374 = arith.addf %370, %373 : vector<8x128xf32>
      %375 = math.tanh %374 : vector<8x128xf32>
      %cst_112 = arith.constant 1.000000e+00 : f32
      %376 = vector.broadcast %cst_112 : f32 to vector<8x128xf32>
      %377 = arith.subf %376, %369 : vector<8x128xf32>
      %378 = arith.mulf %377, %375 : vector<8x128xf32>
      %379 = arith.mulf %369, %348 : vector<8x128xf32>
      %380 = arith.addf %378, %379 : vector<8x128xf32>
      %381 = arith.addi %0, %c7_i32 : i32
      %382 = vector.broadcast %381 : i32 to vector<8x1xi32>
      %383 = arith.cmpi sgt, %77, %382 : vector<8x1xi32>
      %384 = vector.shape_cast %383 : vector<8x1xi1> to vector<8x1xi1>
      %385 = vector.broadcast %384 : vector<8x1xi1> to vector<8x128xi1>
      %386 = arith.select %385, %380, %348 : vector<8x128xi1>, vector<8x128xf32>
      %c8_i32_113 = arith.constant 8 : i32
      %c0_114 = arith.constant 0 : index
      %c0_115 = arith.constant 0 : index
      %387 = vector.load %arg12[%c0_114, %c0_115] : memref<8x128xf32, #tpu.memory_space<vmem>>, vector<8x128xf32>
      tpu.vector_store %arg12[%c0_114, %c0_115], %386 {strides = array<i32>} : memref<8x128xf32, #tpu.memory_space<vmem>>, vector<8x128xf32>,
    } else {
    }
    %c2_i32 = arith.constant 2 : i32
    %8 = arith.cmpi eq, %arg1, %c2_i32 : i32
    %9 = arith.extui %8 : i1 to i32
    %c0_i32_2 = arith.constant 0 : i32
    %10 = arith.cmpi ne, %9, %c0_i32_2 : i32
    scf.if %10 {
      %c0_3 = arith.constant 0 : index
      %c0_4 = arith.constant 0 : index
      %11 = vector.load %arg12[%c0_3, %c0_4] : memref<8x128xf32, #tpu.memory_space<vmem>>, vector<8x128xf32>
      %12 = arith.truncf %11 : vector<8x128xf32> to vector<8x128xbf16>
      %c0_5 = arith.constant 0 : index
      %c0_6 = arith.constant 0 : index
      %13 = vector.load %arg9[%c0_5, %c0_6] : memref<128x128xbf16, #tpu.memory_space<vmem>>, vector<128x128xbf16>
      %cst = arith.constant dense<0.000000e+00> : vector<8x128xf32>
      %14 = tpu.matmul %12, %13, %cst {dimension_numbers = #tpu.dot_dimension_numbers<[1], [0], [0], [1], [0, 0, 1, 1], [], []>} : vector<8x128xbf16>, vector<128x128xbf16>, vector<8x128xf32> -> vector<8x128xf32>
      %c0_7 = arith.constant 0 : index
      %c0_8 = arith.constant 0 : index
      %15 = vector.load %arg10[%c0_7, %c0_8] : memref<1x128xf32, #tpu.memory_space<vmem>>, vector<1x128xf32>
      %16 = vector.broadcast %15 : vector<1x128xf32> to vector<8x128xf32>
      %17 = arith.addf %14, %16 : vector<8x128xf32>
      %c0_9 = arith.constant 0 : index
      %c0_10 = arith.constant 0 : index
      %18 = vector.load %arg11[%c0_9, %c0_10] : memref<8x128xf32, #tpu.memory_space<vmem>>, vector<8x128xf32>
      tpu.vector_store %arg11[%c0_9, %c0_10], %17 {strides = array<i32>} : memref<8x128xf32, #tpu.memory_space<vmem>>, vector<8x128xf32>,
    } else {
    }
    return
  }
  func.func @transform_0(%arg0: i32, %arg1: i32, %arg2: memref<1xi32, #tpu.memory_space<smem>>) -> (i32, i32) {
    %c0_i32 = arith.constant 0 : i32
    %c0_i32_0 = arith.constant 0 : i32
    return %arg0, %c0_i32 : i32, i32
  }
  func.func @transform_1(%arg0: i32, %arg1: i32, %arg2: memref<1xi32, #tpu.memory_space<smem>>) -> (i32, i32, i32) {
    %c0 = arith.constant 0 : index
    %0 = memref.load %arg2[%c0] : memref<1xi32, #tpu.memory_space<smem>>
    %c7_i32 = arith.constant 7 : i32
    %1 = arith.addi %0, %c7_i32 : i32
    %c8_i32 = arith.constant 8 : i32
    %2 = arith.divsi %1, %c8_i32 : i32
    %c1_i32 = arith.constant 1 : i32
    %3 = arith.subi %2, %c1_i32 : i32
    %c0_i32 = arith.constant 0 : i32
    %4 = arith.maxsi %3, %c0_i32 : i32
    %5 = arith.minsi %arg1, %4 : i32
    %c0_i32_0 = arith.constant 0 : i32
    %c0_i32_1 = arith.constant 0 : i32
    return %5, %arg0, %c0_i32_0 : i32, i32, i32
  }
  func.func @transform_2(%arg0: i32, %arg1: i32, %arg2: memref<1xi32, #tpu.memory_space<smem>>) -> (i32, i32) {
    %c0_i32 = arith.constant 0 : i32
    %c0_i32_0 = arith.constant 0 : i32
    %c0_i32_1 = arith.constant 0 : i32
    return %c0_i32, %c0_i32_0 : i32, i32
  }
  func.func @transform_3(%arg0: i32, %arg1: i32, %arg2: memref<1xi32, #tpu.memory_space<smem>>) -> (i32, i32) {
    %c0_i32 = arith.constant 0 : i32
    %c0_i32_0 = arith.constant 0 : i32
    %c0_i32_1 = arith.constant 0 : i32
    return %c0_i32, %c0_i32_0 : i32, i32
  }
  func.func @transform_4(%arg0: i32, %arg1: i32, %arg2: memref<1xi32, #tpu.memory_space<smem>>) -> (i32, i32) {
    %c0_i32 = arith.constant 0 : i32
    %c0_i32_0 = arith.constant 0 : i32
    %c0_i32_1 = arith.constant 0 : i32
    return %c0_i32, %c0_i32_0 : i32, i32
  }
  func.func @transform_5(%arg0: i32, %arg1: i32, %arg2: memref<1xi32, #tpu.memory_space<smem>>) -> (i32, i32) {
    %c0_i32 = arith.constant 0 : i32
    %c0_i32_0 = arith.constant 0 : i32
    %c0_i32_1 = arith.constant 0 : i32
    return %c0_i32, %c0_i32_0 : i32, i32
  }
  func.func @transform_6(%arg0: i32, %arg1: i32, %arg2: memref<1xi32, #tpu.memory_space<smem>>) -> (i32, i32) {
    %c0_i32 = arith.constant 0 : i32
    %c0_i32_0 = arith.constant 0 : i32
    %c0_i32_1 = arith.constant 0 : i32
    return %c0_i32, %c0_i32_0 : i32, i32
  }
  func.func @transform_7(%arg0: i32, %arg1: i32, %arg2: memref<1xi32, #tpu.memory_space<smem>>) -> (i32, i32) {
    %c0_i32 = arith.constant 0 : i32
    %c0_i32_0 = arith.constant 0 : i32
    %c0_i32_1 = arith.constant 0 : i32
    return %c0_i32, %c0_i32_0 : i32, i32
  }
  func.func @transform_8(%arg0: i32, %arg1: i32, %arg2: memref<1xi32, #tpu.memory_space<smem>>) -> (i32, i32) {
    %c0_i32 = arith.constant 0 : i32
    %c0_i32_0 = arith.constant 0 : i32
    return %arg0, %c0_i32 : i32, i32
  }
}

</mosaic_0001>

<bundles_post_ra>
// kernel: tpu_custom_call.1
= control target key start
LH: loop header
LB: loop body
LE: loop exit
PB: predicated region body
PF: predicated region fallthrough
CT: control target
= control target key end

     0   :  { %s4060_s0 = inlined_call_operand.<no memory space> [shape: s32[1], index: 0, kind: input, shape index: {}]   ;;  %s4061_s1 = inlined_call_operand.vmem [shape: s32[8,1], index: 1, kind: input, shape index: {}]   ;;  %s4062_s2 = inlined_call_operand.vmem [shape: bf16[24,8,16], index: 2, kind: input, shape index: {}]   ;;  %s4063_s3 = inlined_call_operand.vmem [shape: bf16[16,384], index: 3, kind: input, shape index: {}]   ;;  %s4064_s4 = inlined_call_operand.vmem [shape: f32[1,384], index: 4, kind: input, shape index: {}]   ;;  %s4065_s5 = inlined_call_operand.hbm [shape: bf16[128,384], index: 5, kind: input, shape index: {}]   ;;  %s4066_s6 = inlined_call_operand.vmem [shape: f32[1,128], index: 6, kind: input, shape index: {}]   ;;  %s4067_s7 = inlined_call_operand.vmem [shape: bf16[128,128], index: 7, kind: input, shape index: {}]   ;;  %s4068_s8 = inlined_call_operand.vmem [shape: f32[1,128], index: 8, kind: input, shape index: {}]   ;;  %s4069_s9 = inlined_call_operand.hbm [shape: f32[8,128], index: 9, kind: output, shape index: {}]  }
   0x1   :  { %14 = sst [smem:[#allocation5]] %s4060_s0 }
   0x2   :  { %15 = vsyncpa [#allocation7], 0 }
   0x3   :  { %16 = vsyncpa [#allocation8], 0  ;;  %s3288_s11 = smov 0   ;;  %s3290_s12 = smov 0  }
   0x4   :  { %s3292_s13 = smov 0  }
   0x5 LB: > { %s2519_s0 = sadd.s32 4294967295, %s3223_s13   ;;  %s31_s14 = sadd.s32 1, %s3219_s12  ;;  %s3223_s13 = sphi %s3292_s13, %s22_s13   ;;  %s3219_s12 = sphi %s3290_s12, %s4090_s12   ;;  %s3215_s11 = sphi %s3288_s11, %s4089_s11  }
   0x6   : > { %p32_p0 = scmp.ge.s32.totalorder %s31_s14, 3  ;;  %p2524_p1 = scmp.ge.s32.totalorder %s3223_s13, 1 }
   0x7   : > { %p271_p2 = scmp.lt.s32.totalorder %s3223_s13, 4  ;;  %p3315_p4 = scmp.eq.s32.totalorder %s2519_s0, 0 }
   0x8   : > { %s4092_s14 = smov (%p32_p0, %s31_s14), 0  ;;  %s3225_s17 = smov [#allocation6]  }
   0x9   : > { %p3309_p3 = pnand %p2524_p1, %p271_p2  ;;  %s296_s18 = sshll.u32 %s3225_s17, 4  ;;  %s297_s18 = int_to_ptr.vmem [resolvable:$true] %s296_s18 }
   0xa   : > { %s3154_s19 = scalar_lea.vmem %s297_s18, 3072  ;;  %p3162_p11 = scmp.lt.s32.totalorder %s297_s18, %s297_s18 }
   0xb   : > { %p2951_p5 = pneg %p3309_p3  ;;  %p3155_p8 = scmp.ne.s32.totalorder %s297_s18, %s3154_s19 }
   0xc   : > { %p3163_p12 = scmp.lt.s32.totalorder %s3154_s19, %s3154_s19 }
   0xd   : > { %p2952_p6 = pnand %p3315_p4, %p2951_p5 }
   0xe   : > { %p3164_p13 = por %p3163_p12, %p3162_p11 }
   0xf   : > { %p3145_p7 = pneg %p2952_p6 }
  0x11   : > { %p3157_p9 = pnand %p3155_p8, %p3145_p7 }
  0x13   : > { %p3158_p10 = pneg %p3157_p9 }
  0x15   : > { %p3165_p0 = pnand %p3164_p13, %p3158_p10 }
  0x17   : > { %3168 = shalt.err (!%p3165_p0)
}
  0x18   : > { %s3226_s20 = smov 192   ;;  %s3227_s21 = smov 12  }
  0x19   : > { %2954 = dma.hbm_to_vmem [thread:$0]  (!%p2952_p6), %s4065_s5, 3072, %s297_s18, [#allocation7], %s3226_s20, %s3226_s20, %s3227_s21  }
  0x1a   : > { %359 = sbr.rel (%p3309_p3) target bundleno = 2436 (0x984), region = 52 }
  0x1f   : > { %3206 = dma.done.wait (%p3315_p4), [#allocation7], 3072  }
  0x20   : > { %3208 = vsyncadd (%p3315_p4), [#allocation7], 4294964224  ;;  %s3333_s24 = sshll.u32 %s3215_s11, 3  ;;  %s412_s25 = sld [smem:[#allocation5]] }
  0x21   : > { %p2535_p5 = scmp.ne.s32.totalorder %s3215_s11, 0 }
  0x26   : > { %s413_s26 = sadd.s32 7, %s412_s25 }
  0x27   : > { %p414_p1 = scmp.lt.s32.totalorder %s413_s26, 0  ;;  %s415_s27 = ssub.s32 0, %s413_s26 }
  0x28   : > { %s2530_s28 = smin.u32 %s415_s27, %s413_s26 }
  0x29   : > { %s417_s29 = sshrl.u32 %s2530_s28, 3 }
  0x2a   : > { %s418_s30 = ssub.s32 0, %s417_s29 }
  0x2b   : > { %s4094_s30 = smov (!%p414_p1, %s418_s30), %s417_s29 }
  0x2c   : > { %s2531_s10 = sadd.s32 4294967295, %s4094_s30 }
  0x2d   : > { %p421_p2 = scmp.gt.s32.totalorder %s2531_s10, 0 }
  0x2f   : > { %s4096_s10 = smov (!%p421_p2, %s2531_s10), 0 }
  0x30   : > { %p423_p3 = scmp.lt.s32.totalorder %s3215_s11, %s4096_s10 }
  0x32   : > { %s424_s15 = scalar_select %p423_p3, %s3215_s11, %s4096_s10 }
  0x34   : > { %s2532_s16 = sshll.u32 %s424_s15, 3 }
  0x35   : > { %p426_p4 = scmp.lt.s32.totalorder %s2532_s16, 23  ;;  %452 = sbr.rel (%p2535_p5) target bundleno = 60 (0x3c), region = 60 }
  0x37   : > { %s4098_s16 = smov (!%p426_p4, %s2532_s16), 23 }
  0x38   : > { %s2533_s17 = sshll.u32 %s4098_s16, 2 }
  0x39   : > { %s3340_s20 = scalar_lea.vmem %s4062_s2, %s2533_s17 }
  0x3a   : > { %v3228_v0 = vmov 0.0  }
  0x3b   : > { %453 = vst [vmem:[#allocation2] sm:$0xff] %v3228_v0 }
  0x3c PF: > { %s454_s21 = sld [smem:[#allocation5]] }
  0x42   : > { %p2536_p6 = scmp.ge.s32.totalorder %s3333_s24, %s454_s21 }
  0x44   : > { %458 = sbr.rel (%p2536_p6) target bundleno = 2182 (0x886), region = 64 }
  0x49   : > { %v3347_v1 = vld [vmem:[%s4063_s3 + $0x4] ss:$12 sps:$4 sm:$0xff]   ;;  %v3352_v2 = vld [vmem:[%s4063_s3] ss:$12 sps:$4 sm:$0xff]   ;;  %v4070_v3 = vmov 0   ;;  %vm497_vm0 = vcmask 130048   ;;  %v1491_v29 = vstv %s3333_s24  ;;  %v466_v49 = vlaneseq }
  0x4a   : > { %533 = vmatprep.mubr.bf16.mxu0 %v4070_v3  ;;  %2993 = vset.pattern.permute.xlu0 %v4070_v3  ;;  %v464_v4 = vld [vmem:[%s3340_s20] sm:$0xf]  ;;  %v4072_v5 = vmov 0.0   ;;  %v3364_v6 = vld [vmem:[%s4063_s3 + $0x8] ss:$12 sps:$4 sm:$0xff]   ;;  %vm3231_vm1 = vmmov 0  }
  0x4b   : > { %515 = vmatprep.subr.bf16.mxu0 %v3347_v1  ;;  %2994 = vset.pattern.permute.xlu1 %v4070_v3  ;;  %v2542_v7 = vld [vmem:[%s3340_s20 + $0x4] sm:$0xf]  ;;  %v2545_v8 = vld [vmem:[%s3340_s20 + $0x8] sm:$0xf]  ;;  %v2548_v9 = vld [vmem:[%s3340_s20 + $0xc] sm:$0xf] }
  0x4c   : > { %516 = vmatpush1.bf16.msra.mxu0 %v3352_v2  ;;  %2715 = vmatprep.subr.bf16.mxu1 %v4072_v5  ;;  %v2551_v10 = vld [vmem:[%s3340_s20 + $0x10] sm:$0xf]  ;;  %v2554_v11 = vld [vmem:[%s3340_s20 + $0x14] sm:$0xf]  ;;  %v2557_v12 = vld [vmem:[%s3340_s20 + $0x18] sm:$0xf] }
  0x4d   : > { %604 = vmatprep.subr.bf16.mxu0 %v3347_v1  ;;  %2717 = vmatprep.mubr.msk.bf16.mxu1 %vm3231_vm1, %v4072_v5  ;;  %v3431_v13 = vld [vmem:[#allocation6 + $0xac] ss:$12 sps:$4 sm:$0xff]   ;;  %v2560_v14 = vld [vmem:[%s3340_s20 + $0x1c] sm:$0xf]  ;;  %v3447_v17 = vld [vmem:[#allocation6 + $0xb0] ss:$12 sps:$4 sm:$0xff]  }
  0x4e   : > { %2716 = vmatpush3.bf16.msra.mxu1 %v3364_v6  ;;  %v3443_v15 = vld [vmem:[#allocation6 + $0xa8] ss:$12 sps:$4 sm:$0xff]   ;;  %v3451_v18 = vld [vmem:[#allocation6 + $0x90] ss:$12 sps:$4 sm:$0xff]   ;;  %v3459_v20 = vld [vmem:[#allocation6 + $0x98] ss:$12 sps:$4 sm:$0xff]  }
  0x4f   : > { %2540 = vmatmul.mubr.msk.bf16.vlgmr.msra.gmra.mxu0 %vm497_vm0, %v464_v4  ;;  %2721 = vmatprep.subr.bf16.mxu1 %v4072_v5  ;;  %v3445_v16 = vld [vmem:[#allocation6 + $0x94] ss:$12 sps:$4 sm:$0xff]   ;;  %v3455_v19 = vld [vmem:[#allocation6 + $0x7c] ss:$12 sps:$4 sm:$0xff]   ;;  %v3465_v21 = vld [vmem:[#allocation6 + $0x78] ss:$12 sps:$4 sm:$0xff]  }
  0x50   : > { %605 = vmatpush1.bf16.msra.mxu0 %v3352_v2  ;;  %622 = vmatprep.mubr.bf16.mxu0 %v4070_v3  ;;  %v3468_v22 = vld [vmem:[#allocation6 + $0x64] ss:$12 sps:$4 sm:$0xff]   ;;  %v3471_v23 = vld [vmem:[#allocation6 + $0x80] ss:$12 sps:$4 sm:$0xff]   ;;  %v3481_v26 = vld [vmem:[#allocation6 + $0x68] ss:$12 sps:$4 sm:$0xff]  }
  0x51   : > { %694 = vmatprep.subr.bf16.mxu0 %v3347_v1  ;;  %2718 = vmatmul.mubr.msk.bf16.vlgmr.msra.gmra.mxu1 %vm497_vm0, %v464_v4  ;;  %v3475_v24 = vld [vmem:[#allocation6 + $0x60] ss:$12 sps:$4 sm:$0xff]   ;;  %v3485_v27 = vld [vmem:[#allocation6 + $0x48] ss:$12 sps:$4 sm:$0xff]   ;;  %v3490_v28 = vld [vmem:[%s4061_s1] sm:$0xff]  ;;  %s1606_s10 = sadd.s32 1, %s3333_s24 }
  0x52   : > { %2722 = vmatpush3.bf16.msra.mxu1 %v3364_v6  ;;  %2723 = vmatprep.mubr.msk.bf16.mxu1 %vm3231_vm1, %v4072_v5  ;;  %v3478_v25 = vld [vmem:[#allocation6 + $0x4c] ss:$12 sps:$4 sm:$0xff]   ;;  %v3494_v30 = vld [vmem:[#allocation6 + $0x34] ss:$12 sps:$4 sm:$0xff]   ;;  %vm1492_vm2 = vcmp.gt.s32.totalorder %v3490_v28, %v1491_v29  ;;  %v3498_v31 = vld [vmem:[#allocation6 + $0x50] ss:$12 sps:$4 sm:$0xff]   ;;  %v1607_v34 = vstv %s1606_s10 }
  0x53   : > { %2727 = vmatprep.subr.bf16.mxu1 %v4072_v5  ;;  %v1493_v32 = vsel %vm1492_vm2, 1, %v4070_v3  ;;  %v3504_v33 = vld [vmem:[#allocation6 + $0x30] ss:$12 sps:$4 sm:$0xff]   ;;  %vm1608_vm3 = vcmp.gt.s32.totalorder %v3490_v28, %v1607_v34  ;;  %v3511_v36 = vld [vmem:[#allocation6 + $0x38] ss:$12 sps:$4 sm:$0xff]   ;;  %s1954_s15 = sadd.s32 4, %s3333_s24 }
  0x54   : > { %1495 = vperm.xlu0 %2993, %v1493_v32   ;;  %v3507_v35 = vld [vmem:[#allocation6 + $0x1c] ss:$12 sps:$4 sm:$0xff]   ;;  %v1609_v37 = vsel %vm1608_vm3, 1, %v4070_v3  ;;  %v3517_v38 = vld [vmem:[#allocation6 + $0x18] ss:$12 sps:$4 sm:$0xff]   ;;  %v1955_v39 = vstv %s1954_s15  ;;  %s2186_s16 = sadd.s32 6, %s3333_s24 }
  0x55   : > { %v3520_v40 = vld [vmem:[#allocation6 + $0x4] ss:$12 sps:$4 sm:$0xff]   ;;  %vm1956_vm4 = vcmp.gt.s32.totalorder %v3490_v28, %v1955_v39  ;;  %v3524_v41 = vld [vmem:[#allocation6 + $0x20] ss:$12 sps:$4 sm:$0xff]   ;;  %v3532_v44 = vld [vmem:[#allocation2] sm:$0xff]  ;;  %v2187_v45 = vstv %s2186_s16  ;;  %v467_v50 = vshrl.u32 %v466_v49, 7 }
  0x56   : > { %v1957_v42 = vsel %vm1956_vm4, 1, %v4070_v3  ;;  %v3530_v43 = vld [vmem:[#allocation6] ss:$12 sps:$4 sm:$0xff]   ;;  %vm2188_vm5 = vcmp.gt.s32.totalorder %v3490_v28, %v2187_v45  ;;  %v3537_v46 = vld [vmem:[#allocation6 + $0x8] ss:$12 sps:$4 sm:$0xff]   ;;  %v1259_v48 = vpack.c.bf16 %v3532_v44, %v3532_v44  ;;  %s1722_s21 = sadd.s32 2, %s3333_s24 }
  0x57   : > { %2543 = vmatmul.mubr.msk.bf16.vlgmr.msra.gmra.mxu0 %vm497_vm0, %v2542_v7  ;;  %v2189_v47 = vsel %vm2188_vm5, 1, %v4070_v3  ;;  %v468_v54 = vsub.s32 0, %v467_v50  ;;  %v463_v55 = vld [vmem:[%s4064_s4] sm:$0x7]  ;;  %v472_v58 = vsub.s32 1, %v467_v50  ;;  %v476_v59 = vsub.s32 2, %v467_v50 }
  0x58   : > { %695 = vmatpush1.bf16.msra.mxu0 %v3352_v2  ;;  %712 = vmatprep.mubr.bf16.mxu0 %v4070_v3  ;;  %s1838_s22 = sadd.s32 3, %s3333_s24  ;;  %s2070_s23 = sadd.s32 5, %s3333_s24 }
  0x59   : > { %784 = vmatprep.subr.bf16.mxu0 %v3347_v1  ;;  %2724 = vmatmul.mubr.msk.bf16.vlgmr.msra.gmra.mxu1 %vm497_vm0, %v2542_v7  ;;  %v3591_v62 = vrot.slane %v463_v55, %v468_v54  ;;  %v3598_v4 = vrot.slane %v463_v55, %v476_v59  ;;  %s2302_s25 = sadd.s32 7, %s3333_s24 }
  0x5a   : > { %2728 = vmatpush3.bf16.msra.mxu1 %v3364_v6  ;;  %2729 = vmatprep.mubr.msk.bf16.mxu1 %vm3231_vm1, %v4072_v5 }
  0x5b   : > { %2733 = vmatprep.subr.bf16.mxu1 %v4072_v5  ;;  %1611 = vperm.xlu0 %2993, %v1609_v37  }
  0x5f   : > { %2546 = vmatmul.mubr.msk.bf16.vlgmr.msra.gmra.mxu0 %vm497_vm0, %v2545_v8  ;;  %1959 = vperm.xlu0 %2993, %v1957_v42  }
  0x60   : > { %785 = vmatpush1.bf16.msra.mxu0 %v3352_v2  ;;  %802 = vmatprep.mubr.bf16.mxu0 %v4070_v3 }
  0x61   : > { %874 = vmatprep.subr.bf16.mxu0 %v3347_v1  ;;  %2730 = vmatmul.mubr.msk.bf16.vlgmr.msra.gmra.mxu1 %vm497_vm0, %v2545_v8 }
  0x62   : > { %2734 = vmatpush3.bf16.msra.mxu1 %v3364_v6  ;;  %2735 = vmatprep.mubr.msk.bf16.mxu1 %vm3231_vm1, %v4072_v5 }
  0x63   : > { %2739 = vmatprep.subr.bf16.mxu1 %v4072_v5  ;;  %2191 = vperm.xlu0 %2993, %v2189_v47  }
  0x67   : > { %2549 = vmatmul.mubr.msk.bf16.vlgmr.msra.gmra.mxu0 %vm497_vm0, %v2548_v9 }
  0x68   : > { %875 = vmatpush1.bf16.msra.mxu0 %v3352_v2  ;;  %892 = vmatprep.mubr.bf16.mxu0 %v4070_v3 }
  0x69   : > { %964 = vmatprep.subr.bf16.mxu0 %v3347_v1  ;;  %2736 = vmatmul.mubr.msk.bf16.vlgmr.msra.gmra.mxu1 %vm497_vm0, %v2548_v9 }
  0x6a   : > { %2740 = vmatpush3.bf16.msra.mxu1 %v3364_v6  ;;  %2741 = vmatprep.mubr.msk.bf16.mxu1 %vm3231_vm1, %v4072_v5 }
  0x6b   : > { %2745 = vmatprep.subr.bf16.mxu1 %v4072_v5 }
  0x6f   : > { %2552 = vmatmul.mubr.msk.bf16.vlgmr.msra.gmra.mxu0 %vm497_vm0, %v2551_v10 }
  0x70   : > { %965 = vmatpush1.bf16.msra.mxu0 %v3352_v2  ;;  %982 = vmatprep.mubr.bf16.mxu0 %v4070_v3 }
  0x71   : > { %1054 = vmatprep.subr.bf16.mxu0 %v3347_v1  ;;  %2742 = vmatmul.mubr.msk.bf16.vlgmr.msra.gmra.mxu1 %vm497_vm0, %v2551_v10 }
  0x72   : > { %2746 = vmatpush3.bf16.msra.mxu1 %v3364_v6  ;;  %2747 = vmatprep.mubr.msk.bf16.mxu1 %vm3231_vm1, %v4072_v5 }
  0x73   : > { %2751 = vmatprep.subr.bf16.mxu1 %v4072_v5 }
  0x77   : > { %2555 = vmatmul.mubr.msk.bf16.vlgmr.msra.gmra.mxu0 %vm497_vm0, %v2554_v11 }
  0x78   : > { %1055 = vmatpush1.bf16.msra.mxu0 %v3352_v2  ;;  %1072 = vmatprep.mubr.bf16.mxu0 %v4070_v3 }
  0x79   : > { %1144 = vmatprep.subr.bf16.mxu0 %v3347_v1  ;;  %2748 = vmatmul.mubr.msk.bf16.vlgmr.msra.gmra.mxu1 %vm497_vm0, %v2554_v11  ;;  %v3593_v1 = vrot.slane %v463_v55, %v472_v58 }
  0x7a   : > { %2752 = vmatpush3.bf16.msra.mxu1 %v3364_v6  ;;  %2753 = vmatprep.mubr.msk.bf16.mxu1 %vm3231_vm1, %v4072_v5 }
  0x7b   : > { %2757 = vmatprep.subr.bf16.mxu1 %v4072_v5 }
  0x7f   : > { %2558 = vmatmul.mubr.msk.bf16.vlgmr.msra.gmra.mxu0 %vm497_vm0, %v2557_v12 }
  0x80   : > { %1145 = vmatpush1.bf16.msra.mxu0 %v3352_v2  ;;  %1162 = vmatprep.mubr.bf16.mxu0 %v4070_v3 }
  0x81   : > { %1388 = vmatprep.subr.bf16.mxu0 %v3431_v13  ;;  %2754 = vmatmul.mubr.msk.bf16.vlgmr.msra.gmra.mxu1 %vm497_vm0, %v2557_v12 }
  0x82   : > { %2758 = vmatpush3.bf16.msra.mxu1 %v3364_v6  ;;  %2759 = vmatprep.mubr.msk.bf16.mxu1 %vm3231_vm1, %v4072_v5 }
  0x83   : > { %2763 = vmatprep.subr.bf16.mxu1 %v4072_v5 }
  0x87   : > { %2561 = vmatmul.mubr.msk.bf16.vlgmr.msra.gmra.mxu0 %vm497_vm0, %v2560_v14 }
  0x88   : > { %1389 = vmatpush1.bf16.msra.mxu0 %v3443_v15  ;;  %1420 = vmatprep.mubr.bf16.mxu0 %v4070_v3 }
  0x89   : > { %1390 = vmatprep.subr.bf16.mxu0 %v3445_v16  ;;  %2760 = vmatmul.mubr.msk.bf16.vlgmr.msra.gmra.mxu1 %vm497_vm0, %v2560_v14 }
  0x8a   : > { %2764 = vmatpush3.bf16.msra.mxu1 %v3447_v17  ;;  %2779 = vmatprep.mubr.msk.bf16.mxu1 %vm3231_vm1, %v4072_v5 }
  0x8b   : > { %2765 = vmatprep.subr.bf16.mxu1 %v4072_v5 }
  0x8c   : > { %1391 = vmatpush1.bf16.msra.mxu0 %v3451_v18 }
  0x8d   : > { %1392 = vmatprep.subr.bf16.mxu0 %v3455_v19 }
  0x8e   : > { %2766 = vmatpush3.bf16.msra.mxu1 %v3459_v20 }
  0x8f   : > { %2767 = vmatprep.subr.bf16.mxu1 %v4072_v5 }
  0x90   : > { %1393 = vmatpush1.bf16.msra.mxu0 %v3465_v21 }
  0x91   : > { %1394 = vmatprep.subr.bf16.mxu0 %v3468_v22 }
  0x92   : > { %2768 = vmatpush3.bf16.msra.mxu1 %v3471_v23 }
  0x93   : > { %2769 = vmatprep.subr.bf16.mxu1 %v4072_v5 }
  0x94   : > { %1395 = vmatpush1.bf16.msra.mxu0 %v3475_v24 }
  0x95   : > { %1396 = vmatprep.subr.bf16.mxu0 %v3478_v25 }
  0x96   : > { %2770 = vmatpush3.bf16.msra.mxu1 %v3481_v26 }
  0x97   : > { %2771 = vmatprep.subr.bf16.mxu1 %v4072_v5 }
  0x98   : > { %1397 = vmatpush1.bf16.msra.mxu0 %v3485_v27 }
  0x99   : > { %1398 = vmatprep.subr.bf16.mxu0 %v3494_v30 }
  0x9a   : > { %2772 = vmatpush3.bf16.msra.mxu1 %v3498_v31 }
  0x9b   : > { %2773 = vmatprep.subr.bf16.mxu1 %v4072_v5 }
  0x9c   : > { %1399 = vmatpush1.bf16.msra.mxu0 %v3504_v33 }
  0x9d   : > { %1400 = vmatprep.subr.bf16.mxu0 %v3507_v35 }
  0x9e   : > { %2774 = vmatpush3.bf16.msra.mxu1 %v3511_v36 }
  0x9f   : > { %2775 = vmatprep.subr.bf16.mxu1 %v4072_v5 }
  0xa0   : > { %1401 = vmatpush1.bf16.msra.mxu0 %v3517_v38 }
  0xa1   : > { %1402 = vmatprep.subr.bf16.mxu0 %v3520_v40 }
  0xa2   : > { %2776 = vmatpush3.bf16.msra.mxu1 %v3524_v41 }
  0xa3   : > { %2777 = vmatprep.subr.bf16.mxu1 %v4072_v5 }
  0xa4   : > { %1403 = vmatpush1.bf16.msra.mxu0 %v3530_v43 }
  0xa5   : > { %1503 = vmatprep.subr.bf16.mxu0 %v3431_v13 }
  0xa6   : > { %2778 = vmatpush3.bf16.msra.mxu1 %v3537_v46 }
  0xa7   : > { %1421 = vmatmul.mubr.bf16.vlgmr.msra.gmra.mxu0 %v1259_v48  ;;  %2783 = vmatprep.subr.bf16.mxu1 %v4072_v5 }
  0xa8   : > { %1504 = vmatpush1.bf16.msra.mxu0 %v3443_v15  ;;  %1535 = vmatprep.mubr.bf16.mxu0 %v4070_v3 }
  0xa9   : > { %2780 = vmatmul.mubr.bf16.vlgmr.msra.gmra.mxu1 %v1259_v48  ;;  %1505 = vmatprep.subr.bf16.mxu0 %v3445_v16 }
  0xaa   : > { %2784 = vmatpush3.bf16.msra.mxu1 %v3447_v17  ;;  %2799 = vmatprep.mubr.msk.bf16.mxu1 %vm3231_vm1, %v4072_v5 }
  0xab   : > { %2785 = vmatprep.subr.bf16.mxu1 %v4072_v5 }
  0xac   : > { %1506 = vmatpush1.bf16.msra.mxu0 %v3451_v18 }
  0xad   : > { %1507 = vmatprep.subr.bf16.mxu0 %v3455_v19 }
  0xae   : > { %2786 = vmatpush3.bf16.msra.mxu1 %v3459_v20 }
  0xaf   : > { %2787 = vmatprep.subr.bf16.mxu1 %v4072_v5 }
  0xb0   : > { %1508 = vmatpush1.bf16.msra.mxu0 %v3465_v21 }
  0xb1   : > { %1509 = vmatprep.subr.bf16.mxu0 %v3468_v22 }
  0xb2   : > { %2788 = vmatpush3.bf16.msra.mxu1 %v3471_v23 }
  0xb3   : > { %2789 = vmatprep.subr.bf16.mxu1 %v4072_v5 }
  0xb4   : > { %1510 = vmatpush1.bf16.msra.mxu0 %v3475_v24 }
  0xb5   : > { %1511 = vmatprep.subr.bf16.mxu0 %v3478_v25 }
  0xb6   : > { %2790 = vmatpush3.bf16.msra.mxu1 %v3481_v26 }
  0xb7   : > { %2791 = vmatprep.subr.bf16.mxu1 %v4072_v5 }
  0xb8   : > { %1512 = vmatpush1.bf16.msra.mxu0 %v3485_v27 }
  0xb9   : > { %1513 = vmatprep.subr.bf16.mxu0 %v3494_v30 }
  0xba   : > { %2792 = vmatpush3.bf16.msra.mxu1 %v3498_v31 }
  0xbb   : > { %2793 = vmatprep.subr.bf16.mxu1 %v4072_v5 }
  0xbc   : > { %1514 = vmatpush1.bf16.msra.mxu0 %v3504_v33 }
  0xbd   : > { %1515 = vmatprep.subr.bf16.mxu0 %v3507_v35 }
  0xbe   : > { %2794 = vmatpush3.bf16.msra.mxu1 %v3511_v36 }
  0xbf   : > { %2795 = vmatprep.subr.bf16.mxu1 %v4072_v5 }
  0xc0   : > { %1516 = vmatpush1.bf16.msra.mxu0 %v3517_v38 }
  0xc1   : > { %1517 = vmatprep.subr.bf16.mxu0 %v3520_v40 }
  0xc2   : > { %2796 = vmatpush3.bf16.msra.mxu1 %v3524_v41 }
  0xc3   : > { %2797 = vmatprep.subr.bf16.mxu1 %v4072_v5 }
  0xc4   : > { %1518 = vmatpush1.bf16.msra.mxu0 %v3530_v43 }
  0xc5   : > { %1619 = vmatprep.subr.bf16.mxu0 %v3431_v13 }
  0xc6   : > { %2798 = vmatpush3.bf16.msra.mxu1 %v3537_v46 }
  0xc7   : > { %2803 = vmatprep.subr.bf16.mxu1 %v4072_v5 }
 0x10f   : > { %v3582_v51 = vpop.f32.mrf.mxu0 }
 0x111   : > { %v3584_v52 = vpop.f32.mrf.mxu0  ;;  %v3586_v53 = vpop.f32.mrf.mxu1 }
 0x113   : > { %v539_v56 = vpop.f32.mrf.mxu0  ;;  %v2719_v57 = vpop.f32.mrf.mxu1 }
 0x115   : > { %v540_v60 = vpop.f32.mrf.mxu0  ;;  %v579_v61 = vpop.f32.mrf.mxu1 }
 0x117   : > { %v624_v63 = vpop.f32.mrf.mxu0  ;;  %v2720_v0 = vpop.f32.mrf.mxu1 }
 0x118   : > { %v3596_v2 = vadd.f32 %v624_v63, %v3591_v62 }
 0x119   : > { %v626_v6 = vpop.f32.mrf.mxu0  ;;  %v665_v7 = vpop.f32.mrf.mxu1 }
 0x11a   : > { %v3601_v8 = vadd.f32 %v626_v6, %v3593_v1  ;;  %v3604_v9 = vadd.f32 %v665_v7, %v3598_v4 }
 0x11b   : > { %v628_v10 = vpop.f32.mrf.mxu0  ;;  %v2725_v11 = vpop.f32.mrf.mxu1 }
 0x11d   : > { %v629_v12 = vpop.f32.mrf.mxu0  ;;  %v668_v14 = vpop.f32.mrf.mxu1 }
 0x11f   : > { %v714_v29 = vpop.f32.mrf.mxu0  ;;  %v2726_v32 = vpop.f32.mrf.mxu1 }
 0x120   : > { %v3607_v34 = vadd.f32 %v714_v29, %v3591_v62 }
 0x121   : > { %v716_v37 = vpop.f32.mrf.mxu0  ;;  %v755_v39 = vpop.f32.mrf.mxu1 }
 0x122   : > { %v3610_v42 = vadd.f32 %v716_v37, %v3593_v1  ;;  %v3613_v45 = vadd.f32 %v755_v39, %v3598_v4 }
 0x123   : > { %v718_v47 = vpop.f32.mrf.mxu0  ;;  %v2731_v48 = vpop.f32.mrf.mxu1 }
 0x125   : > { %v719_v49 = vpop.f32.mrf.mxu0  ;;  %v758_v50 = vpop.f32.mrf.mxu1 }
 0x127   : > { %v804_v54 = vpop.f32.mrf.mxu0  ;;  %v2732_v55 = vpop.f32.mrf.mxu1 }
 0x128   : > { %v3616_v56 = vadd.f32 %v804_v54, %v3591_v62 }
 0x129   : > { %v806_v57 = vpop.f32.mrf.mxu0  ;;  %v845_v58 = vpop.f32.mrf.mxu1 }
 0x12a   : > { %v3619_v59 = vadd.f32 %v806_v57, %v3593_v1  ;;  %v3622_v60 = vadd.f32 %v845_v58, %v3598_v4 }
 0x12b   : > { %v808_v61 = vpop.f32.mrf.mxu0  ;;  %v2737_v63 = vpop.f32.mrf.mxu1 }
 0x12d   : > { %v809_v0 = vpop.f32.mrf.mxu0  ;;  %v848_v6 = vpop.f32.mrf.mxu1 }
 0x12f   : > { %v894_v7 = vpop.f32.mrf.mxu0  ;;  %v2738_v10 = vpop.f32.mrf.mxu1 }
 0x130   : > { %v3625_v11 = vadd.f32 %v894_v7, %v3591_v62 }
 0x131   : > { %v896_v12 = vpop.f32.mrf.mxu0  ;;  %v935_v14 = vpop.f32.mrf.mxu1 }
 0x132   : > { %v3628_v29 = vadd.f32 %v896_v12, %v3593_v1  ;;  %v3631_v32 = vadd.f32 %v935_v14, %v3598_v4 }
 0x133   : > { %v898_v37 = vpop.f32.mrf.mxu0  ;;  %v2743_v39 = vpop.f32.mrf.mxu1 }
 0x135   : > { %v899_v47 = vpop.f32.mrf.mxu0  ;;  %v938_v48 = vpop.f32.mrf.mxu1 }
 0x137   : > { %v984_v49 = vpop.f32.mrf.mxu0  ;;  %v2744_v50 = vpop.f32.mrf.mxu1 }
 0x138   : > { %v3634_v54 = vadd.f32 %v984_v49, %v3591_v62 }
 0x139   : > { %v986_v55 = vpop.f32.mrf.mxu0  ;;  %v1025_v57 = vpop.f32.mrf.mxu1 }
 0x13a   : > { %v3637_v58 = vadd.f32 %v986_v55, %v3593_v1  ;;  %v3640_v61 = vadd.f32 %v1025_v57, %v3598_v4 }
 0x13b   : > { %v988_v63 = vpop.f32.mrf.mxu0  ;;  %v2749_v0 = vpop.f32.mrf.mxu1 }
 0x13d   : > { %v989_v6 = vpop.f32.mrf.mxu0  ;;  %v1028_v7 = vpop.f32.mrf.mxu1 }
 0x13f   : > { %v1074_v10 = vpop.f32.mrf.mxu0  ;;  %v2750_v12 = vpop.f32.mrf.mxu1 }
 0x140   : > { %v3643_v14 = vadd.f32 %v1074_v10, %v3591_v62 }
 0x141   : > { %v1076_v37 = vpop.f32.mrf.mxu0  ;;  %v1115_v39 = vpop.f32.mrf.mxu1 }
 0x142   : > { %4076 = vst [vmem:[#allocation12_spill] sm:$0xff] %v3643_v14  ;;  %v3646_v47 = vadd.f32 %v1076_v37, %v3593_v1  ;;  %v3649_v48 = vadd.f32 %v1115_v39, %v3598_v4 }
 0x143   : > { %v1078_v49 = vpop.f32.mrf.mxu0  ;;  %v2755_v50 = vpop.f32.mrf.mxu1 }
 0x144   : > { %4077 = vst [vmem:[#allocation13_spill] sm:$0xff] %v3646_v47  ;;  %4078 = vst [vmem:[#allocation14_spill] sm:$0xff] %v3649_v48 }
 0x145   : > { %v1079_v55 = vpop.f32.mrf.mxu0  ;;  %v1118_v57 = vpop.f32.mrf.mxu1 }
 0x146   : > { %v536_v55 = vadd.f32 %v3582_v51, %v3591_v62 }
 0x147   : > { %v1164_v63 = vpop.f32.mrf.mxu0  ;;  %v2756_v0 = vpop.f32.mrf.mxu1 }
 0x148   : > { %v3652_v6 = vadd.f32 %v1164_v63, %v3591_v62  ;;  %v3667_v62 = vld [vmem:[%s4066_s6] ss:$0 sm:$0xff] }
 0x149   : > { %v1166_v7 = vpop.f32.mrf.mxu0  ;;  %v1205_v10 = vpop.f32.mrf.mxu1 }
 0x14a   : > { %4079 = vst [vmem:[#allocation15_spill] sm:$0xff] %v3652_v6  ;;  %v3655_v12 = vadd.f32 %v1166_v7, %v3593_v1  ;;  %v3658_v37 = vadd.f32 %v1205_v10, %v3598_v4  ;;  %v538_v7 = vadd.f32 %v3584_v52, %v3593_v1  ;;  %v577_v1 = vadd.f32 %v3586_v53, %v3598_v4 }
 0x14b   : > { %v1168_v3 = vpop.f32.mrf.mxu0  ;;  %v2761_v39 = vpop.f32.mrf.mxu1  ;;  %v4081_v53 = vmov 0.0   ;;  %v4082_v4 = vmov 0  }
 0x14c   : > { %4080 = vst [vmem:[#allocation16_spill] sm:$0xff] %v3658_v37 }
 0x14d   : > { %v1169_v5 = vpop.f32.mrf.mxu0  ;;  %v1208_v49 = vpop.f32.mrf.mxu1 }
 0x14f   : > { %v2762_v50 = vpop.f32.mrf.mxu1 }
 0x167   : > { %v1422_v57 = vpop.f32.mrf.mxu0 }
 0x168   : > { %v1469_v0 = vadd.f32 %v1422_v57, %v536_v55 }
 0x169   : > { %v1424_v63 = vpop.f32.mrf.mxu0  ;;  %v1463_v6 = vpop.f32.mrf.mxu1 }
 0x16a   : > { %v2588_v48 = vmul.f32 -1.442695, %v1469_v0  ;;  %v1476_v39 = vadd.f32 %v1424_v63, %v538_v7  ;;  %v1496_v63 = vpop.permute.xlu0 %1495 }
 0x16b   : > { %v1426_v47 = vpop.f32.mrf.mxu0  ;;  %v2781_v14 = vpop.f32.mrf.mxu1  ;;  %vm1497_vm6 = vcmp.eq.s32.totalorder %v1496_v63, 1 }
 0x16c   : > { %3031 = vpow2.f32 %v2588_v48  ;;  %v2589_v49 = vmul.f32 -1.442695, %v1476_v39  ;;  %v1483_v47 = vadd.f32 %v3667_v62, %v1463_v6 }
 0x16d   : > { %v1427_v10 = vpop.f32.mrf.mxu0  ;;  %v1466_v3 = vpop.f32.mrf.mxu1 }
 0x16e   : > { %3033 = vpow2.f32 %v2589_v49 }
 0x16f   : > { %v2782_v5 = vpop.f32.mrf.mxu1 }
 0x170   : > { %v1839_v5 = vstv %s1838_s22 }
 0x171   : > { %vm1840_vm8 = vcmp.gt.s32.totalorder %v3490_v28, %v1839_v5 }
 0x179   : > { %v3032_v50 = vpop.eup %3031 }
 0x17a   : > { %v1473_v37 = vadd.f32 1.0, %v3032_v50  ;;  %v2071_v50 = vstv %s2070_s23 }
 0x17b   : > { %v3034_v51 = vpop.eup %3033  ;;  %vm2072_vm9 = vcmp.gt.s32.totalorder %v3490_v28, %v2071_v50 }
 0x17c   : > { %3035 = vrcp.f32 %v1473_v37  ;;  %v1480_v14 = vadd.f32 1.0, %v3034_v51  ;;  %v1841_v51 = vsel %vm1840_vm8, 1, %v4082_v4 }
 0x17e   : > { %3037 = vrcp.f32 %v1480_v14  ;;  %v2303_v14 = vstv %s2302_s25 }
 0x17f   : > { %vm2304_vm10 = vcmp.gt.s32.totalorder %v3490_v28, %v2303_v14 }
 0x189   : > { %v3036_v52 = vpop.eup %3035 }
 0x18a   : > { %v1484_v48 = vmul.f32 %v3036_v52, %v1483_v47  ;;  %v2073_v47 = vsel %vm2072_vm9, 1, %v4082_v4  ;;  %v2305_v52 = vsel %vm2304_vm10, 1, %v4082_v4 }
 0x18b   : > { %v3038_v57 = vpop.eup %3037 }
 0x18c   : > { %v1485_v55 = vadd.f32 %v1484_v48, %v577_v1  ;;  %v1487_v0 = vsub.f32 1.0, %v3038_v57  ;;  %v1489_v10 = vmul.f32 %v3038_v57, %v3532_v44 }
 0x18e   : > { %3039 = vtanh.f32 %v1485_v55 }
 0x19b   : > { %v3040_v37 = vpop.eup %3039 }
 0x19c   : > { %v1488_v7 = vmul.f32 %v3040_v37, %v1487_v0 }
 0x19e   : > { %v1490_v3 = vadd.f32 %v1489_v10, %v1488_v7 }
 0x1a0   : > { %v3674_v39 = vsel %vm1497_vm6, %v1490_v3, %v3532_v44  ;;  %v1723_v44 = vstv %s1722_s21 }
 0x1a1   : > { %v1502_v6 = vpack.c.bf16 %v3674_v39, %v3674_v39  ;;  %vm1724_vm7 = vcmp.gt.s32.totalorder %v3490_v28, %v1723_v44 }
 0x1a2   : > { %v1725_v49 = vsel %vm1724_vm7, 1, %v4082_v4 }
 0x1a3   : > { %1536 = vmatmul.mubr.bf16.vlgmr.msra.gmra.mxu0 %v1502_v6  ;;  %2800 = vmatmul.mubr.bf16.vlgmr.msra.gmra.mxu1 %v1502_v6 }
 0x1a4   : > { %1620 = vmatpush1.bf16.msra.mxu0 %v3443_v15  ;;  %2804 = vmatpush3.bf16.msra.mxu1 %v3447_v17 }
 0x1a5   : > { %1621 = vmatprep.subr.bf16.mxu0 %v3445_v16  ;;  %2805 = vmatprep.subr.bf16.mxu1 %v4081_v53 }
 0x1a6   : > { %1651 = vmatprep.mubr.bf16.mxu0 %v4082_v4  ;;  %2819 = vmatprep.mubr.msk.bf16.mxu1 %vm3231_vm1, %v4081_v53 }
 0x1a7   : > { %1727 = vperm.xlu1 %2994, %v1725_v49  }
 0x1a8   : > { %1622 = vmatpush1.bf16.msra.mxu0 %v3451_v18  ;;  %2806 = vmatpush3.bf16.msra.mxu1 %v3459_v20 }
 0x1a9   : > { %1623 = vmatprep.subr.bf16.mxu0 %v3455_v19  ;;  %2807 = vmatprep.subr.bf16.mxu1 %v4081_v53 }
 0x1ab   : > { %1843 = vperm.xlu1 %2994, %v1841_v51  }
 0x1ac   : > { %1624 = vmatpush1.bf16.msra.mxu0 %v3465_v21  ;;  %2808 = vmatpush3.bf16.msra.mxu1 %v3471_v23 }
 0x1ad   : > { %1625 = vmatprep.subr.bf16.mxu0 %v3468_v22  ;;  %2809 = vmatprep.subr.bf16.mxu1 %v4081_v53 }
 0x1af   : > { %2075 = vperm.xlu1 %2994, %v2073_v47  }
 0x1b0   : > { %1626 = vmatpush1.bf16.msra.mxu0 %v3475_v24  ;;  %2810 = vmatpush3.bf16.msra.mxu1 %v3481_v26 }
 0x1b1   : > { %1627 = vmatprep.subr.bf16.mxu0 %v3478_v25  ;;  %2811 = vmatprep.subr.bf16.mxu1 %v4081_v53 }
 0x1b3   : > { %2307 = vperm.xlu1 %2994, %v2305_v52  }
 0x1b4   : > { %1628 = vmatpush1.bf16.msra.mxu0 %v3485_v27  ;;  %2812 = vmatpush3.bf16.msra.mxu1 %v3498_v31 }
 0x1b5   : > { %1629 = vmatprep.subr.bf16.mxu0 %v3494_v30  ;;  %2813 = vmatprep.subr.bf16.mxu1 %v4081_v53 }
 0x1b8   : > { %1630 = vmatpush1.bf16.msra.mxu0 %v3504_v33  ;;  %2814 = vmatpush3.bf16.msra.mxu1 %v3511_v36 }
 0x1b9   : > { %1631 = vmatprep.subr.bf16.mxu0 %v3507_v35  ;;  %2815 = vmatprep.subr.bf16.mxu1 %v4081_v53 }
 0x1bc   : > { %1632 = vmatpush1.bf16.msra.mxu0 %v3517_v38  ;;  %2816 = vmatpush3.bf16.msra.mxu1 %v3524_v41 }
 0x1bd   : > { %1633 = vmatprep.subr.bf16.mxu0 %v3520_v40  ;;  %2817 = vmatprep.subr.bf16.mxu1 %v4081_v53 }
 0x1c0   : > { %1634 = vmatpush1.bf16.msra.mxu0 %v3530_v43  ;;  %2818 = vmatpush3.bf16.msra.mxu1 %v3537_v46 }
 0x1c1   : > { %1735 = vmatprep.subr.bf16.mxu0 %v3431_v13  ;;  %2823 = vmatprep.subr.bf16.mxu1 %v4081_v53 }
 0x263   : > { %v1537_v1 = vpop.f32.mrf.mxu0  ;;  %v1578_v48 = vpop.f32.mrf.mxu1 }
 0x264   : > { %v1584_v55 = vadd.f32 %v1537_v1, %v3596_v2  ;;  %v1598_v51 = vadd.f32 %v3667_v62, %v1578_v48 }
 0x265   : > { %v1539_v57 = vpop.f32.mrf.mxu0  ;;  %v2801_v0 = vpop.f32.mrf.mxu1 }
 0x266   : > { %v2590_v37 = vmul.f32 -1.442695, %v1584_v55  ;;  %v1591_v6 = vadd.f32 %v1539_v57, %v3601_v8  ;;  %v1612_v57 = vpop.permute.xlu0 %1611 }
 0x267   : > { %v1541_v63 = vpop.f32.mrf.mxu0  ;;  %v1581_v7 = vpop.f32.mrf.mxu1  ;;  %vm1613_vm11 = vcmp.eq.s32.totalorder %v1612_v57, 1 }
 0x268   : > { %3041 = vpow2.f32 %v2590_v37  ;;  %v2591_v44 = vmul.f32 -1.442695, %v1591_v6 }
 0x269   : > { %v1542_v10 = vpop.f32.mrf.mxu0  ;;  %v2802_v3 = vpop.f32.mrf.mxu1 }
 0x26a   : > { %3043 = vpow2.f32 %v2591_v44 }
 0x275   : > { %v3042_v28 = vpop.eup %3041 }
 0x276   : > { %v1588_v5 = vadd.f32 1.0, %v3042_v28 }
 0x277   : > { %v3044_v49 = vpop.eup %3043 }
 0x278   : > { %3045 = vrcp.f32 %v1588_v5  ;;  %v1595_v50 = vadd.f32 1.0, %v3044_v49 }
 0x27a   : > { %3047 = vrcp.f32 %v1595_v50 }
 0x285   : > { %v3046_v2 = vpop.eup %3045 }
 0x286   : > { %v1599_v14 = vmul.f32 %v3046_v2, %v1598_v51 }
 0x287   : > { %v3048_v52 = vpop.eup %3047 }
 0x288   : > { %v1600_v47 = vadd.f32 %v1599_v14, %v3604_v9  ;;  %v1602_v1 = vsub.f32 1.0, %v3048_v52  ;;  %v1604_v8 = vmul.f32 %v3048_v52, %v3674_v39 }
 0x28a   : > { %3049 = vtanh.f32 %v1600_v47 }
 0x297   : > { %v3050_v55 = vpop.eup %3049 }
 0x298   : > { %v1603_v0 = vmul.f32 %v3050_v55, %v1602_v1 }
 0x29a   : > { %v1605_v37 = vadd.f32 %v1604_v8, %v1603_v0 }
 0x29c   : > { %v3731_v63 = vsel %vm1613_vm11, %v1605_v37, %v3674_v39 }
 0x29d   : > { %v1618_v48 = vpack.c.bf16 %v3731_v63, %v3731_v63 }
 0x29f   : > { %1652 = vmatmul.mubr.bf16.vlgmr.msra.gmra.mxu0 %v1618_v48  ;;  %2820 = vmatmul.mubr.bf16.vlgmr.msra.gmra.mxu1 %v1618_v48  ;;  %v1728_v48 = vpop.permute.xlu1 %1727 }
 0x2a0   : > { %1736 = vmatpush1.bf16.msra.mxu0 %v3443_v15  ;;  %2824 = vmatpush3.bf16.msra.mxu1 %v3447_v17  ;;  %vm1729_vm12 = vcmp.eq.s32.totalorder %v1728_v48, 1 }
 0x2a1   : > { %1737 = vmatprep.subr.bf16.mxu0 %v3445_v16  ;;  %2825 = vmatprep.subr.bf16.mxu1 %v4081_v53 }
 0x2a2   : > { %1767 = vmatprep.mubr.bf16.mxu0 %v4082_v4  ;;  %2839 = vmatprep.mubr.msk.bf16.mxu1 %vm3231_vm1, %v4081_v53 }
 0x2a4   : > { %1738 = vmatpush1.bf16.msra.mxu0 %v3451_v18  ;;  %2826 = vmatpush3.bf16.msra.mxu1 %v3459_v20 }
 0x2a5   : > { %1739 = vmatprep.subr.bf16.mxu0 %v3455_v19  ;;  %2827 = vmatprep.subr.bf16.mxu1 %v4081_v53 }
 0x2a8   : > { %1740 = vmatpush1.bf16.msra.mxu0 %v3465_v21  ;;  %2828 = vmatpush3.bf16.msra.mxu1 %v3471_v23 }
 0x2a9   : > { %1741 = vmatprep.subr.bf16.mxu0 %v3468_v22  ;;  %2829 = vmatprep.subr.bf16.mxu1 %v4081_v53 }
 0x2ac   : > { %1742 = vmatpush1.bf16.msra.mxu0 %v3475_v24  ;;  %2830 = vmatpush3.bf16.msra.mxu1 %v3481_v26 }
 0x2ad   : > { %1743 = vmatprep.subr.bf16.mxu0 %v3478_v25  ;;  %2831 = vmatprep.subr.bf16.mxu1 %v4081_v53 }
 0x2b0   : > { %1744 = vmatpush1.bf16.msra.mxu0 %v3485_v27  ;;  %2832 = vmatpush3.bf16.msra.mxu1 %v3498_v31 }
 0x2b1   : > { %1745 = vmatprep.subr.bf16.mxu0 %v3494_v30  ;;  %2833 = vmatprep.subr.bf16.mxu1 %v4081_v53 }
 0x2b4   : > { %1746 = vmatpush1.bf16.msra.mxu0 %v3504_v33  ;;  %2834 = vmatpush3.bf16.msra.mxu1 %v3511_v36 }
 0x2b5   : > { %1747 = vmatprep.subr.bf16.mxu0 %v3507_v35  ;;  %2835 = vmatprep.subr.bf16.mxu1 %v4081_v53 }
 0x2b8   : > { %1748 = vmatpush1.bf16.msra.mxu0 %v3517_v38  ;;  %2836 = vmatpush3.bf16.msra.mxu1 %v3524_v41 }
 0x2b9   : > { %1749 = vmatprep.subr.bf16.mxu0 %v3520_v40  ;;  %2837 = vmatprep.subr.bf16.mxu1 %v4081_v53 }
 0x2bc   : > { %1750 = vmatpush1.bf16.msra.mxu0 %v3530_v43  ;;  %2838 = vmatpush3.bf16.msra.mxu1 %v3537_v46 }
 0x2bd   : > { %1851 = vmatprep.subr.bf16.mxu0 %v3431_v13  ;;  %2843 = vmatprep.subr.bf16.mxu1 %v4081_v53 }
 0x35f   : > { %v1653_v9 = vpop.f32.mrf.mxu0  ;;  %v1694_v39 = vpop.f32.mrf.mxu1 }
 0x360   : > { %v1700_v7 = vadd.f32 %v1653_v9, %v3607_v34  ;;  %v1714_v1 = vadd.f32 %v3667_v62, %v1694_v39 }
 0x361   : > { %v1655_v10 = vpop.f32.mrf.mxu0  ;;  %v2821_v3 = vpop.f32.mrf.mxu1 }
 0x362   : > { %v2592_v6 = vmul.f32 -1.442695, %v1700_v7  ;;  %v1707_v50 = vadd.f32 %v1655_v10, %v3610_v42 }
 0x363   : > { %v1657_v44 = vpop.f32.mrf.mxu0  ;;  %v1697_v28 = vpop.f32.mrf.mxu1 }
 0x364   : > { %3051 = vpow2.f32 %v2592_v6  ;;  %v2593_v51 = vmul.f32 -1.442695, %v1707_v50 }
 0x365   : > { %v1658_v5 = vpop.f32.mrf.mxu0  ;;  %v2822_v49 = vpop.f32.mrf.mxu1 }
 0x366   : > { %3053 = vpow2.f32 %v2593_v51 }
 0x371   : > { %v3052_v2 = vpop.eup %3051 }
 0x372   : > { %v1704_v14 = vadd.f32 1.0, %v3052_v2 }
 0x373   : > { %v3054_v47 = vpop.eup %3053 }
 0x374   : > { %3055 = vrcp.f32 %v1704_v14  ;;  %v1711_v52 = vadd.f32 1.0, %v3054_v47 }
 0x376   : > { %3057 = vrcp.f32 %v1711_v52 }
 0x381   : > { %v3056_v34 = vpop.eup %3055 }
 0x382   : > { %v1715_v55 = vmul.f32 %v3056_v34, %v1714_v1 }
 0x383   : > { %v3058_v8 = vpop.eup %3057 }
 0x384   : > { %v1716_v0 = vadd.f32 %v1715_v55, %v3613_v45  ;;  %v1718_v57 = vsub.f32 1.0, %v3058_v8  ;;  %v1720_v9 = vmul.f32 %v3058_v8, %v3731_v63 }
 0x386   : > { %3059 = vtanh.f32 %v1716_v0 }
 0x393   : > { %v3060_v37 = vpop.eup %3059 }
 0x394   : > { %v1719_v42 = vmul.f32 %v3060_v37, %v1718_v57 }
 0x396   : > { %v1721_v7 = vadd.f32 %v1720_v9, %v1719_v42  ;;  %v1844_v42 = vpop.permute.xlu1 %1843 }
 0x397   : > { %vm1845_vm13 = vcmp.eq.s32.totalorder %v1844_v42, 1 }
 0x398   : > { %v3776_v10 = vsel %vm1729_vm12, %v1721_v7, %v3731_v63 }
 0x399   : > { %v1734_v39 = vpack.c.bf16 %v3776_v10, %v3776_v10 }
 0x39b   : > { %1768 = vmatmul.mubr.bf16.vlgmr.msra.gmra.mxu0 %v1734_v39  ;;  %2840 = vmatmul.mubr.bf16.vlgmr.msra.gmra.mxu1 %v1734_v39 }
 0x39c   : > { %1852 = vmatpush1.bf16.msra.mxu0 %v3443_v15  ;;  %2844 = vmatpush3.bf16.msra.mxu1 %v3447_v17 }
 0x39d   : > { %1853 = vmatprep.subr.bf16.mxu0 %v3445_v16  ;;  %2845 = vmatprep.subr.bf16.mxu1 %v4081_v53 }
 0x39e   : > { %1883 = vmatprep.mubr.bf16.mxu0 %v4082_v4  ;;  %2859 = vmatprep.mubr.msk.bf16.mxu1 %vm3231_vm1, %v4081_v53 }
 0x3a0   : > { %1854 = vmatpush1.bf16.msra.mxu0 %v3451_v18  ;;  %2846 = vmatpush3.bf16.msra.mxu1 %v3459_v20 }
 0x3a1   : > { %1855 = vmatprep.subr.bf16.mxu0 %v3455_v19  ;;  %2847 = vmatprep.subr.bf16.mxu1 %v4081_v53 }
 0x3a4   : > { %1856 = vmatpush1.bf16.msra.mxu0 %v3465_v21  ;;  %2848 = vmatpush3.bf16.msra.mxu1 %v3471_v23 }
 0x3a5   : > { %1857 = vmatprep.subr.bf16.mxu0 %v3468_v22  ;;  %2849 = vmatprep.subr.bf16.mxu1 %v4081_v53 }
 0x3a8   : > { %1858 = vmatpush1.bf16.msra.mxu0 %v3475_v24  ;;  %2850 = vmatpush3.bf16.msra.mxu1 %v3481_v26 }
 0x3a9   : > { %1859 = vmatprep.subr.bf16.mxu0 %v3478_v25  ;;  %2851 = vmatprep.subr.bf16.mxu1 %v4081_v53 }
 0x3ac   : > { %1860 = vmatpush1.bf16.msra.mxu0 %v3485_v27  ;;  %2852 = vmatpush3.bf16.msra.mxu1 %v3498_v31 }
 0x3ad   : > { %1861 = vmatprep.subr.bf16.mxu0 %v3494_v30  ;;  %2853 = vmatprep.subr.bf16.mxu1 %v4081_v53 }
 0x3b0   : > { %1862 = vmatpush1.bf16.msra.mxu0 %v3504_v33  ;;  %2854 = vmatpush3.bf16.msra.mxu1 %v3511_v36 }
 0x3b1   : > { %1863 = vmatprep.subr.bf16.mxu0 %v3507_v35  ;;  %2855 = vmatprep.subr.bf16.mxu1 %v4081_v53 }
 0x3b4   : > { %1864 = vmatpush1.bf16.msra.mxu0 %v3517_v38  ;;  %2856 = vmatpush3.bf16.msra.mxu1 %v3524_v41 }
 0x3b5   : > { %1865 = vmatprep.subr.bf16.mxu0 %v3520_v40  ;;  %2857 = vmatprep.subr.bf16.mxu1 %v4081_v53 }
 0x3b8   : > { %1866 = vmatpush1.bf16.msra.mxu0 %v3530_v43  ;;  %2858 = vmatpush3.bf16.msra.mxu1 %v3537_v46 }
 0x3b9   : > { %1967 = vmatprep.subr.bf16.mxu0 %v3431_v13  ;;  %2863 = vmatprep.subr.bf16.mxu1 %v4081_v53 }
 0x45b   : > { %v1769_v45 = vpop.f32.mrf.mxu0  ;;  %v1810_v63 = vpop.f32.mrf.mxu1 }
 0x45c   : > { %v1816_v3 = vadd.f32 %v1769_v45, %v3616_v56  ;;  %v1830_v34 = vadd.f32 %v3667_v62, %v1810_v63 }
 0x45d   : > { %v1771_v6 = vpop.f32.mrf.mxu0  ;;  %v2841_v44 = vpop.f32.mrf.mxu1 }
 0x45e   : > { %v2594_v28 = vmul.f32 -1.442695, %v1816_v3  ;;  %v1823_v2 = vadd.f32 %v1771_v6, %v3619_v59  ;;  %v3872_v6 = vld [vmem:[#allocation6 + $0xa8] ss:$12 sps:$4 sm:$0xff]  }
 0x45f   : > { %v1773_v5 = vpop.f32.mrf.mxu0  ;;  %v1813_v49 = vpop.f32.mrf.mxu1  ;;  %v3878_v44 = vld [vmem:[#allocation6 + $0x94] ss:$12 sps:$4 sm:$0xff]  }
 0x460   : > { %3061 = vpow2.f32 %v2594_v28  ;;  %v2595_v14 = vmul.f32 -1.442695, %v1823_v2  ;;  %v3885_v28 = vld [vmem:[#allocation6 + $0x90] ss:$12 sps:$4 sm:$0xff]   ;;  %v3888_v5 = vld [vmem:[#allocation6 + $0x98] ss:$12 sps:$4 sm:$0xff]  }
 0x461   : > { %v1774_v50 = vpop.f32.mrf.mxu0  ;;  %v2842_v51 = vpop.f32.mrf.mxu1  ;;  %v3891_v49 = vld [vmem:[#allocation6 + $0x7c] ss:$12 sps:$4 sm:$0xff]   ;;  %v3901_v2 = vld [vmem:[#allocation6 + $0x64] ss:$12 sps:$4 sm:$0xff]  }
 0x462   : > { %3063 = vpow2.f32 %v2595_v14  ;;  %v3895_v50 = vld [vmem:[#allocation6 + $0x78] ss:$12 sps:$4 sm:$0xff]   ;;  %v3898_v51 = vld [vmem:[#allocation6 + $0x80] ss:$12 sps:$4 sm:$0xff]  }
 0x463   : > { %v3905_v14 = vld [vmem:[#allocation6 + $0x60] ss:$12 sps:$4 sm:$0xff]  }
 0x46d   : > { %v3062_v47 = vpop.eup %3061 }
 0x46e   : > { %v1820_v13 = vadd.f32 1.0, %v3062_v47  ;;  %v3908_v47 = vld [vmem:[#allocation6 + $0x68] ss:$12 sps:$4 sm:$0xff]  }
 0x46f   : > { %v3064_v52 = vpop.eup %3063 }
 0x470   : > { %3065 = vrcp.f32 %v1820_v13  ;;  %v1827_v1 = vadd.f32 1.0, %v3064_v52  ;;  %v3911_v13 = vld [vmem:[#allocation6 + $0x4c] ss:$12 sps:$4 sm:$0xff]   ;;  %v3915_v52 = vld [vmem:[#allocation6 + $0x48] ss:$12 sps:$4 sm:$0xff]  }
 0x472   : > { %3067 = vrcp.f32 %v1827_v1  ;;  %v3918_v1 = vld [vmem:[#allocation6 + $0x50] ss:$12 sps:$4 sm:$0xff]  }
 0x47d   : > { %v3066_v56 = vpop.eup %3065 }
 0x47e   : > { %v1831_v55 = vmul.f32 %v3066_v56, %v1830_v34  ;;  %v3921_v34 = vld [vmem:[#allocation6 + $0x34] ss:$12 sps:$4 sm:$0xff]   ;;  %v3925_v56 = vld [vmem:[#allocation6 + $0x30] ss:$12 sps:$4 sm:$0xff]  }
 0x47f   : > { %v3068_v8 = vpop.eup %3067 }
 0x480   : > { %v1832_v0 = vadd.f32 %v1831_v55, %v3622_v60  ;;  %v1834_v57 = vsub.f32 1.0, %v3068_v8  ;;  %v1836_v59 = vmul.f32 %v3068_v8, %v3776_v10  ;;  %v3928_v55 = vld [vmem:[#allocation6 + $0x38] ss:$12 sps:$4 sm:$0xff]  }
 0x481   : > { %v3935_v8 = vld [vmem:[#allocation6 + $0x18] ss:$12 sps:$4 sm:$0xff]  }
 0x482   : > { %3069 = vtanh.f32 %v1832_v0  ;;  %v3931_v0 = vld [vmem:[#allocation6 + $0x1c] ss:$12 sps:$4 sm:$0xff]  }
 0x48f   : > { %v3070_v37 = vpop.eup %3069 }
 0x490   : > { %v1835_v48 = vmul.f32 %v3070_v37, %v1834_v57  ;;  %v3938_v57 = vld [vmem:[#allocation6 + $0x20] ss:$12 sps:$4 sm:$0xff]   ;;  %v3941_v37 = vld [vmem:[#allocation6 + $0x4] ss:$12 sps:$4 sm:$0xff]  }
 0x492   : > { %v1837_v9 = vadd.f32 %v1836_v59, %v1835_v48  ;;  %v3945_v48 = vld [vmem:[#allocation6] ss:$12 sps:$4 sm:$0xff]   ;;  %v3948_v59 = vld [vmem:[#allocation6 + $0x8] ss:$12 sps:$4 sm:$0xff]  }
 0x494   : > { %v3821_v7 = vsel %vm1845_vm13, %v1837_v9, %v3776_v10  ;;  %v1960_v10 = vpop.permute.xlu0 %1959 }
 0x495   : > { %v1850_v39 = vpack.c.bf16 %v3821_v7, %v3821_v7  ;;  %vm1961_vm14 = vcmp.eq.s32.totalorder %v1960_v10, 1 }
 0x497   : > { %1884 = vmatmul.mubr.bf16.vlgmr.msra.gmra.mxu0 %v1850_v39  ;;  %2860 = vmatmul.mubr.bf16.vlgmr.msra.gmra.mxu1 %v1850_v39 }
 0x498   : > { %1968 = vmatpush1.bf16.msra.mxu0 %v3443_v15  ;;  %2864 = vmatpush3.bf16.msra.mxu1 %v3447_v17  ;;  %v3858_v15 = vld [vmem:[#allocation6 + $0xac] ss:$12 sps:$4 sm:$0xff]  }
 0x499   : > { %1969 = vmatprep.subr.bf16.mxu0 %v3445_v16  ;;  %2865 = vmatprep.subr.bf16.mxu1 %v4081_v53 }
 0x49a   : > { %1999 = vmatprep.mubr.bf16.mxu0 %v4082_v4  ;;  %2879 = vmatprep.mubr.msk.bf16.mxu1 %vm3231_vm1, %v4081_v53 }
 0x49c   : > { %1970 = vmatpush1.bf16.msra.mxu0 %v3451_v18  ;;  %2866 = vmatpush3.bf16.msra.mxu1 %v3459_v20 }
 0x49d   : > { %1971 = vmatprep.subr.bf16.mxu0 %v3455_v19  ;;  %2867 = vmatprep.subr.bf16.mxu1 %v4081_v53 }
 0x4a0   : > { %1972 = vmatpush1.bf16.msra.mxu0 %v3465_v21  ;;  %2868 = vmatpush3.bf16.msra.mxu1 %v3471_v23 }
 0x4a1   : > { %1973 = vmatprep.subr.bf16.mxu0 %v3468_v22  ;;  %2869 = vmatprep.subr.bf16.mxu1 %v4081_v53 }
 0x4a4   : > { %1974 = vmatpush1.bf16.msra.mxu0 %v3475_v24  ;;  %2870 = vmatpush3.bf16.msra.mxu1 %v3481_v26 }
 0x4a5   : > { %1975 = vmatprep.subr.bf16.mxu0 %v3478_v25  ;;  %2871 = vmatprep.subr.bf16.mxu1 %v4081_v53 }
 0x4a8   : > { %1976 = vmatpush1.bf16.msra.mxu0 %v3485_v27  ;;  %2872 = vmatpush3.bf16.msra.mxu1 %v3498_v31 }
 0x4a9   : > { %1977 = vmatprep.subr.bf16.mxu0 %v3494_v30  ;;  %2873 = vmatprep.subr.bf16.mxu1 %v4081_v53 }
 0x4ac   : > { %1978 = vmatpush1.bf16.msra.mxu0 %v3504_v33  ;;  %2874 = vmatpush3.bf16.msra.mxu1 %v3511_v36 }
 0x4ad   : > { %1979 = vmatprep.subr.bf16.mxu0 %v3507_v35  ;;  %2875 = vmatprep.subr.bf16.mxu1 %v4081_v53 }
 0x4b0   : > { %1980 = vmatpush1.bf16.msra.mxu0 %v3517_v38  ;;  %2876 = vmatpush3.bf16.msra.mxu1 %v3524_v41 }
 0x4b1   : > { %1981 = vmatprep.subr.bf16.mxu0 %v3520_v40  ;;  %2877 = vmatprep.subr.bf16.mxu1 %v4081_v53 }
 0x4b4   : > { %1982 = vmatpush1.bf16.msra.mxu0 %v3530_v43  ;;  %2878 = vmatpush3.bf16.msra.mxu1 %v3537_v46 }
 0x4b5   : > { %2083 = vmatprep.subr.bf16.mxu0 %v3858_v15  ;;  %2883 = vmatprep.subr.bf16.mxu1 %v4081_v53 }
 0x557   : > { %v1885_v16 = vpop.f32.mrf.mxu0  ;;  %v1926_v17 = vpop.f32.mrf.mxu1 }
 0x558   : > { %v1932_v18 = vadd.f32 %v1885_v16, %v3625_v11  ;;  %v1946_v36 = vadd.f32 %v3667_v62, %v1926_v17 }
 0x559   : > { %v1887_v19 = vpop.f32.mrf.mxu0  ;;  %v2861_v20 = vpop.f32.mrf.mxu1 }
 0x55a   : > { %v2596_v21 = vmul.f32 -1.442695, %v1932_v18  ;;  %v1939_v26 = vadd.f32 %v1887_v19, %v3628_v29 }
 0x55b   : > { %v1889_v22 = vpop.f32.mrf.mxu0  ;;  %v1929_v23 = vpop.f32.mrf.mxu1 }
 0x55c   : > { %3071 = vpow2.f32 %v2596_v21  ;;  %v2597_v27 = vmul.f32 -1.442695, %v1939_v26 }
 0x55d   : > { %v1890_v24 = vpop.f32.mrf.mxu0  ;;  %v2862_v25 = vpop.f32.mrf.mxu1 }
 0x55e   : > { %3073 = vpow2.f32 %v2597_v27 }
 0x569   : > { %v3072_v30 = vpop.eup %3071 }
 0x56a   : > { %v1936_v31 = vadd.f32 1.0, %v3072_v30 }
 0x56b   : > { %v3074_v33 = vpop.eup %3073 }
 0x56c   : > { %3075 = vrcp.f32 %v1936_v31  ;;  %v1943_v35 = vadd.f32 1.0, %v3074_v33 }
 0x56e   : > { %3077 = vrcp.f32 %v1943_v35 }
 0x579   : > { %v3076_v38 = vpop.eup %3075 }
 0x57a   : > { %v1947_v40 = vmul.f32 %v3076_v38, %v1946_v36 }
 0x57b   : > { %v3078_v43 = vpop.eup %3077 }
 0x57c   : > { %v1948_v41 = vadd.f32 %v1947_v40, %v3631_v32  ;;  %v1950_v46 = vsub.f32 1.0, %v3078_v43  ;;  %v1952_v29 = vmul.f32 %v3078_v43, %v3821_v7  ;;  %v3875_v32 = vld [vmem:[#allocation6 + $0xb0] ss:$12 sps:$4 sm:$0xff]   ;;  %v2076_v40 = vpop.permute.xlu1 %2075 }
 0x57d   : > { %vm2077_vm15 = vcmp.eq.s32.totalorder %v2076_v40, 1 }
 0x57e   : > { %3079 = vtanh.f32 %v1948_v41 }
 0x58b   : > { %v3080_v60 = vpop.eup %3079 }
 0x58c   : > { %v1951_v11 = vmul.f32 %v3080_v60, %v1950_v46  ;;  %v4083_v60 = vld [vmem:[#allocation12_spill] sm:$0xff] }
 0x58e   : > { %v1953_v45 = vadd.f32 %v1952_v29, %v1951_v11 }
 0x590   : > { %v3868_v63 = vsel %vm1961_vm14, %v1953_v45, %v3821_v7 }
 0x591   : > { %v1966_v3 = vpack.c.bf16 %v3868_v63, %v3868_v63 }
 0x593   : > { %2000 = vmatmul.mubr.bf16.vlgmr.msra.gmra.mxu0 %v1966_v3  ;;  %2880 = vmatmul.mubr.bf16.vlgmr.msra.gmra.mxu1 %v1966_v3 }
 0x594   : > { %2084 = vmatpush1.bf16.msra.mxu0 %v3872_v6  ;;  %2884 = vmatpush3.bf16.msra.mxu1 %v3875_v32 }
 0x595   : > { %2085 = vmatprep.subr.bf16.mxu0 %v3878_v44  ;;  %2885 = vmatprep.subr.bf16.mxu1 %v4081_v53 }
 0x596   : > { %2115 = vmatprep.mubr.bf16.mxu0 %v4082_v4  ;;  %2899 = vmatprep.mubr.msk.bf16.mxu1 %vm3231_vm1, %v4081_v53 }
 0x598   : > { %2086 = vmatpush1.bf16.msra.mxu0 %v3885_v28  ;;  %2886 = vmatpush3.bf16.msra.mxu1 %v3888_v5 }
 0x599   : > { %2087 = vmatprep.subr.bf16.mxu0 %v3891_v49  ;;  %2887 = vmatprep.subr.bf16.mxu1 %v4081_v53 }
 0x59c   : > { %2088 = vmatpush1.bf16.msra.mxu0 %v3895_v50  ;;  %2888 = vmatpush3.bf16.msra.mxu1 %v3898_v51 }
 0x59d   : > { %2089 = vmatprep.subr.bf16.mxu0 %v3901_v2  ;;  %2889 = vmatprep.subr.bf16.mxu1 %v4081_v53 }
 0x5a0   : > { %2090 = vmatpush1.bf16.msra.mxu0 %v3905_v14  ;;  %2890 = vmatpush3.bf16.msra.mxu1 %v3908_v47 }
 0x5a1   : > { %2091 = vmatprep.subr.bf16.mxu0 %v3911_v13  ;;  %2891 = vmatprep.subr.bf16.mxu1 %v4081_v53 }
 0x5a4   : > { %2092 = vmatpush1.bf16.msra.mxu0 %v3915_v52  ;;  %2892 = vmatpush3.bf16.msra.mxu1 %v3918_v1 }
 0x5a5   : > { %2093 = vmatprep.subr.bf16.mxu0 %v3921_v34  ;;  %2893 = vmatprep.subr.bf16.mxu1 %v4081_v53 }
 0x5a8   : > { %2094 = vmatpush1.bf16.msra.mxu0 %v3925_v56  ;;  %2894 = vmatpush3.bf16.msra.mxu1 %v3928_v55 }
 0x5a9   : > { %2095 = vmatprep.subr.bf16.mxu0 %v3931_v0  ;;  %2895 = vmatprep.subr.bf16.mxu1 %v4081_v53 }
 0x5ac   : > { %2096 = vmatpush1.bf16.msra.mxu0 %v3935_v8  ;;  %2896 = vmatpush3.bf16.msra.mxu1 %v3938_v57 }
 0x5ad   : > { %2097 = vmatprep.subr.bf16.mxu0 %v3941_v37  ;;  %2897 = vmatprep.subr.bf16.mxu1 %v4081_v53 }
 0x5b0   : > { %2098 = vmatpush1.bf16.msra.mxu0 %v3945_v48  ;;  %2898 = vmatpush3.bf16.msra.mxu1 %v3948_v59 }
 0x5b1   : > { %2199 = vmatprep.subr.bf16.mxu0 %v3858_v15  ;;  %2903 = vmatprep.subr.bf16.mxu1 %v4081_v53 }
 0x653   : > { %v2001_v42 = vpop.f32.mrf.mxu0  ;;  %v2042_v9 = vpop.f32.mrf.mxu1 }
 0x654   : > { %v2048_v7 = vadd.f32 %v2001_v42, %v3634_v54  ;;  %v2062_v27 = vadd.f32 %v3667_v62, %v2042_v9  ;;  %v4086_v9 = vld [vmem:[#allocation15_spill] sm:$0xff] }
 0x655   : > { %v2003_v39 = vpop.f32.mrf.mxu0  ;;  %v2881_v16 = vpop.f32.mrf.mxu1 }
 0x656   : > { %v2598_v17 = vmul.f32 -1.442695, %v2048_v7  ;;  %v2055_v22 = vadd.f32 %v2003_v39, %v3637_v58 }
 0x657   : > { %v2005_v18 = vpop.f32.mrf.mxu0  ;;  %v2045_v19 = vpop.f32.mrf.mxu1 }
 0x658   : > { %3081 = vpow2.f32 %v2598_v17  ;;  %v2599_v23 = vmul.f32 -1.442695, %v2055_v22 }
 0x659   : > { %v2006_v20 = vpop.f32.mrf.mxu0  ;;  %v2882_v21 = vpop.f32.mrf.mxu1 }
 0x65a   : > { %3083 = vpow2.f32 %v2599_v23 }
 0x665   : > { %v3082_v24 = vpop.eup %3081 }
 0x666   : > { %v2052_v15 = vadd.f32 1.0, %v3082_v24 }
 0x667   : > { %v3084_v25 = vpop.eup %3083 }
 0x668   : > { %3085 = vrcp.f32 %v2052_v15  ;;  %v2059_v26 = vadd.f32 1.0, %v3084_v25 }
 0x66a   : > { %3087 = vrcp.f32 %v2059_v26 }
 0x675   : > { %v3086_v54 = vpop.eup %3085 }
 0x676   : > { %v2063_v30 = vmul.f32 %v3086_v54, %v2062_v27 }
 0x677   : > { %v3088_v33 = vpop.eup %3087 }
 0x678   : > { %v2064_v31 = vadd.f32 %v2063_v30, %v3640_v61  ;;  %v2066_v35 = vsub.f32 1.0, %v3088_v33  ;;  %v2068_v58 = vmul.f32 %v3088_v33, %v3868_v63 }
 0x67a   : > { %3089 = vtanh.f32 %v2064_v31  ;;  %v4087_v31 = vld [vmem:[#allocation16_spill] sm:$0xff] }
 0x687   : > { %v3090_v36 = vpop.eup %3089 }
 0x688   : > { %v2067_v38 = vmul.f32 %v3090_v36, %v2066_v35 }
 0x68a   : > { %v2069_v41 = vadd.f32 %v2068_v58, %v2067_v38  ;;  %v2308_v58 = vpop.permute.xlu1 %2307 }
 0x68c   : > { %v3959_v43 = vsel %vm2077_vm15, %v2069_v41, %v3868_v63 }
 0x68d   : > { %v2082_v46 = vpack.c.bf16 %v3959_v43, %v3959_v43 }
 0x68f   : > { %2116 = vmatmul.mubr.bf16.vlgmr.msra.gmra.mxu0 %v2082_v46  ;;  %2900 = vmatmul.mubr.bf16.vlgmr.msra.gmra.mxu1 %v2082_v46 }
 0x690   : > { %2200 = vmatpush1.bf16.msra.mxu0 %v3872_v6  ;;  %2904 = vmatpush3.bf16.msra.mxu1 %v3875_v32 }
 0x691   : > { %2201 = vmatprep.subr.bf16.mxu0 %v3878_v44  ;;  %2905 = vmatprep.subr.bf16.mxu1 %v4081_v53  ;;  %v4084_v44 = vld [vmem:[#allocation13_spill] sm:$0xff] }
 0x692   : > { %2231 = vmatprep.mubr.bf16.mxu0 %v4082_v4  ;;  %2919 = vmatprep.mubr.msk.bf16.mxu1 %vm3231_vm1, %v4081_v53  ;;  %vm2309_vm1 = vcmp.eq.s32.totalorder %v2308_v58, 1 }
 0x694   : > { %2202 = vmatpush1.bf16.msra.mxu0 %v3885_v28  ;;  %2906 = vmatpush3.bf16.msra.mxu1 %v3888_v5 }
 0x695   : > { %2203 = vmatprep.subr.bf16.mxu0 %v3891_v49  ;;  %2907 = vmatprep.subr.bf16.mxu1 %v4081_v53 }
 0x698   : > { %2204 = vmatpush1.bf16.msra.mxu0 %v3895_v50  ;;  %2908 = vmatpush3.bf16.msra.mxu1 %v3898_v51 }
 0x699   : > { %2205 = vmatprep.subr.bf16.mxu0 %v3901_v2  ;;  %2909 = vmatprep.subr.bf16.mxu1 %v4081_v53 }
 0x69c   : > { %2206 = vmatpush1.bf16.msra.mxu0 %v3905_v14  ;;  %2910 = vmatpush3.bf16.msra.mxu1 %v3908_v47 }
 0x69d   : > { %2207 = vmatprep.subr.bf16.mxu0 %v3911_v13  ;;  %2911 = vmatprep.subr.bf16.mxu1 %v4081_v53  ;;  %v4085_v13 = vld [vmem:[#allocation14_spill] sm:$0xff] }
 0x6a0   : > { %2208 = vmatpush1.bf16.msra.mxu0 %v3915_v52  ;;  %2912 = vmatpush3.bf16.msra.mxu1 %v3918_v1 }
 0x6a1   : > { %2209 = vmatprep.subr.bf16.mxu0 %v3921_v34  ;;  %2913 = vmatprep.subr.bf16.mxu1 %v4081_v53 }
 0x6a4   : > { %2210 = vmatpush1.bf16.msra.mxu0 %v3925_v56  ;;  %2914 = vmatpush3.bf16.msra.mxu1 %v3928_v55  ;;  %v2192_v55 = vpop.permute.xlu0 %2191 }
 0x6a5   : > { %2211 = vmatprep.subr.bf16.mxu0 %v3931_v0  ;;  %2915 = vmatprep.subr.bf16.mxu1 %v4081_v53  ;;  %vm2193_vm0 = vcmp.eq.s32.totalorder %v2192_v55, 1 }
 0x6a8   : > { %2212 = vmatpush1.bf16.msra.mxu0 %v3935_v8  ;;  %2916 = vmatpush3.bf16.msra.mxu1 %v3938_v57 }
 0x6a9   : > { %2213 = vmatprep.subr.bf16.mxu0 %v3941_v37  ;;  %2917 = vmatprep.subr.bf16.mxu1 %v4081_v53 }
 0x6ac   : > { %2214 = vmatpush1.bf16.msra.mxu0 %v3945_v48  ;;  %2918 = vmatpush3.bf16.msra.mxu1 %v3948_v59 }
 0x74f   : > { %v2117_v61 = vpop.f32.mrf.mxu0  ;;  %v2158_v4 = vpop.f32.mrf.mxu1 }
 0x750   : > { %v2164_v11 = vadd.f32 %v2117_v61, %v4083_v60  ;;  %v2178_v2 = vadd.f32 %v3667_v62, %v2158_v4 }
 0x751   : > { %v2119_v29 = vpop.f32.mrf.mxu0  ;;  %v2901_v10 = vpop.f32.mrf.mxu1 }
 0x752   : > { %v2600_v45 = vmul.f32 -1.442695, %v2164_v11  ;;  %v2171_v28 = vadd.f32 %v2119_v29, %v4084_v44 }
 0x753   : > { %v2121_v63 = vpop.f32.mrf.mxu0  ;;  %v2161_v3 = vpop.f32.mrf.mxu1 }
 0x754   : > { %3091 = vpow2.f32 %v2600_v45  ;;  %v2601_v5 = vmul.f32 -1.442695, %v2171_v28 }
 0x755   : > { %v2122_v6 = vpop.f32.mrf.mxu0  ;;  %v2902_v32 = vpop.f32.mrf.mxu1 }
 0x756   : > { %3093 = vpow2.f32 %v2601_v5 }
 0x761   : > { %v3092_v53 = vpop.eup %3091 }
 0x762   : > { %v2168_v49 = vadd.f32 1.0, %v3092_v53 }
 0x763   : > { %v3094_v50 = vpop.eup %3093 }
 0x764   : > { %3095 = vrcp.f32 %v2168_v49  ;;  %v2175_v51 = vadd.f32 1.0, %v3094_v50 }
 0x766   : > { %3097 = vrcp.f32 %v2175_v51 }
 0x771   : > { %v3096_v14 = vpop.eup %3095 }
 0x772   : > { %v2179_v47 = vmul.f32 %v3096_v14, %v2178_v2 }
 0x773   : > { %v3098_v1 = vpop.eup %3097 }
 0x774   : > { %v2180_v52 = vadd.f32 %v2179_v47, %v4085_v13  ;;  %v2182_v34 = vsub.f32 1.0, %v3098_v1  ;;  %v2184_v8 = vmul.f32 %v3098_v1, %v3959_v43 }
 0x776   : > { %3099 = vtanh.f32 %v2180_v52 }
 0x783   : > { %v3100_v56 = vpop.eup %3099 }
 0x784   : > { %v2183_v0 = vmul.f32 %v3100_v56, %v2182_v34 }
 0x786   : > { %v2185_v57 = vadd.f32 %v2184_v8, %v2183_v0 }
 0x788   : > { %v2194_v37 = vsel %vm2193_vm0, %v2185_v57, %v3959_v43 }
 0x789   : > { %v2198_v48 = vpack.c.bf16 %v2194_v37, %v2194_v37 }
 0x78b   : > { %2232 = vmatmul.mubr.bf16.vlgmr.msra.gmra.mxu0 %v2198_v48  ;;  %2920 = vmatmul.mubr.bf16.vlgmr.msra.gmra.mxu1 %v2198_v48 }
 0x84b   : > { %v2233_v59 = vpop.f32.mrf.mxu0  ;;  %v2274_v42 = vpop.f32.mrf.mxu1 }
 0x84c   : > { %v2280_v7 = vadd.f32 %v2233_v59, %v4086_v9  ;;  %v2294_v27 = vadd.f32 %v3667_v62, %v2274_v42 }
 0x84d   : > { %v2235_v39 = vpop.f32.mrf.mxu0  ;;  %v2921_v16 = vpop.f32.mrf.mxu1 }
 0x84e   : > { %v2602_v17 = vmul.f32 -1.442695, %v2280_v7  ;;  %v2287_v22 = vadd.f32 %v2235_v39, %v3655_v12 }
 0x84f   : > { %v2237_v18 = vpop.f32.mrf.mxu0  ;;  %v2277_v19 = vpop.f32.mrf.mxu1 }
 0x850   : > { %3101 = vpow2.f32 %v2602_v17  ;;  %v2603_v23 = vmul.f32 -1.442695, %v2287_v22 }
 0x851   : > { %v2238_v20 = vpop.f32.mrf.mxu0  ;;  %v2922_v21 = vpop.f32.mrf.mxu1 }
 0x852   : > { %3103 = vpow2.f32 %v2603_v23 }
 0x85d   : > { %v3102_v24 = vpop.eup %3101 }
 0x85e   : > { %v2284_v15 = vadd.f32 1.0, %v3102_v24 }
 0x85f   : > { %v3104_v25 = vpop.eup %3103 }
 0x860   : > { %3105 = vrcp.f32 %v2284_v15  ;;  %v2291_v26 = vadd.f32 1.0, %v3104_v25 }
 0x862   : > { %3107 = vrcp.f32 %v2291_v26 }
 0x86d   : > { %v3106_v54 = vpop.eup %3105 }
 0x86e   : > { %v2295_v30 = vmul.f32 %v3106_v54, %v2294_v27 }
 0x86f   : > { %v3108_v35 = vpop.eup %3107 }
 0x870   : > { %v2296_v33 = vadd.f32 %v2295_v30, %v4087_v31  ;;  %v2298_v36 = vsub.f32 1.0, %v3108_v35  ;;  %v2300_v40 = vmul.f32 %v3108_v35, %v2194_v37 }
 0x872   : > { %3109 = vtanh.f32 %v2296_v33 }
 0x87f   : > { %v3110_v38 = vpop.eup %3109 }
 0x880   : > { %v2299_v12 = vmul.f32 %v3110_v38, %v2298_v36 }
 0x882   : > { %v2301_v41 = vadd.f32 %v2300_v40, %v2299_v12 }
 0x884   : > { %v2310_v43 = vsel %vm2309_vm1, %v2301_v41, %v2194_v37 }
 0x885   : > { %2311 = vst [vmem:[#allocation2] sm:$0xff] %v2310_v43 }
 0x886 PF: > { %p2604_p7 = scmp.ne.s32.totalorder %s3215_s11, 2 }
 0x888   : > { %2315 = sbr.rel (%p2604_p7) target bundleno = 2421 (0x975), region = 68 }
 0x88d   : > { %v3135_v62 = vld [vmem:[%s4067_s7 + $0x38] sm:$0xff]   ;;  %v3232_v46 = vmov 0.0   ;;  %v3136_v61 = vld [vmem:[%s4067_s7 + $0x30] sm:$0xff]   ;;  %vm3233_vm2 = vmmov 0   ;;  %v3137_v4 = vld [vmem:[%s4067_s7 + $0x28] sm:$0xff]  }
 0x88e   : > { %2923 = vmatprep.subr.bf16.mxu0 %v3232_v46  ;;  %2939 = vmatprep.mubr.msk.bf16.mxu0 %vm3233_vm2, %v3232_v46  ;;  %v3138_v60 = vld [vmem:[%s4067_s7 + $0x20] sm:$0xff]   ;;  %v3139_v11 = vld [vmem:[%s4067_s7 + $0x18] sm:$0xff]   ;;  %v3140_v29 = vld [vmem:[%s4067_s7 + $0x10] sm:$0xff]  }
 0x88f   : > { %2924 = vmatpush3.bf16.msra.mxu0 %v3135_v62  ;;  %v3141_v10 = vld [vmem:[%s4067_s7 + $0x8] sm:$0xff]   ;;  %v3142_v45 = vld [vmem:[%s4067_s7] sm:$0xff]  }
 0x890   : > { %2925 = vmatprep.subr.bf16.mxu0 %v3232_v46  ;;  %v2316_v63 = vld [vmem:[#allocation2] sm:$0xff] }
 0x891   : > { %v2317_v3 = vpack.c.bf16 %v2316_v63, %v2316_v63  ;;  %v2605_v6 = vld [vmem:[%s4068_s8] ss:$0 sm:$0xff] }
 0x893   : > { %2926 = vmatpush3.bf16.msra.mxu0 %v3136_v61 }
 0x894   : > { %2927 = vmatprep.subr.bf16.mxu0 %v3232_v46 }
 0x897   : > { %2928 = vmatpush3.bf16.msra.mxu0 %v3137_v4 }
 0x898   : > { %2929 = vmatprep.subr.bf16.mxu0 %v3232_v46 }
 0x89b   : > { %2930 = vmatpush3.bf16.msra.mxu0 %v3138_v60 }
 0x89c   : > { %2931 = vmatprep.subr.bf16.mxu0 %v3232_v46 }
 0x89f   : > { %2932 = vmatpush3.bf16.msra.mxu0 %v3139_v11 }
 0x8a0   : > { %2933 = vmatprep.subr.bf16.mxu0 %v3232_v46 }
 0x8a3   : > { %2934 = vmatpush3.bf16.msra.mxu0 %v3140_v29 }
 0x8a4   : > { %2935 = vmatprep.subr.bf16.mxu0 %v3232_v46 }
 0x8a7   : > { %2936 = vmatpush3.bf16.msra.mxu0 %v3141_v10 }
 0x8a8   : > { %2937 = vmatprep.subr.bf16.mxu0 %v3232_v46 }
 0x8ab   : > { %2938 = vmatpush3.bf16.msra.mxu0 %v3142_v45 }
 0x8ae   : > { %2940 = vmatmul.mubr.bf16.vlgmr.msra.gmra.mxu0 %v2317_v3 }
 0x96e   : > { %v2423_v32 = vpop.f32.mrf.mxu0 }
 0x96f   : > { %v2424_v44 = vadd.f32 %v2605_v6, %v2423_v32 }
 0x970   : > { %v2941_v28 = vpop.f32.mrf.mxu0 }
 0x971   : > { %2429 = vst [vmem:[#allocation9] sm:$0xff] %v2424_v44 }
 0x972   : > { %v2426_v5 = vpop.f32.mrf.mxu0 }
 0x974   : > { %v2942_v53 = vpop.f32.mrf.mxu0 }
 0x975 PF: > { %p4036_p8 = scmp.eq.s32.totalorder %s2519_s0, 2  ;;  %s3234_s26 = smov [#allocation9]  }
 0x976   : > { %s2439_s27 = sshll.u32 %s3234_s26, 4  ;;  %s2440_s27 = int_to_ptr.vmem [resolvable:$true] %s2439_s27 }
 0x977   : > { %s3169_s28 = scalar_lea.vmem %s2440_s27, 128  ;;  %p3176_p12 = scmp.lt.s32.totalorder %s2440_s27, %s2440_s27 }
 0x978   : > { %p3170_p9 = scmp.ne.s32.totalorder %s2440_s27, %s3169_s28  ;;  %p3177_p13 = scmp.lt.s32.totalorder %s3169_s28, %s3169_s28 }
 0x97a   : > { %p3171_p10 = pnand %p3170_p9, %p4036_p8  ;;  %p3178_p0 = por %p3177_p13, %p3176_p12 }
 0x97c   : > { %p3172_p11 = pneg %p3171_p10 }
 0x97e   : > { %p3179_p1 = pnand %p3178_p0, %p3172_p11 }
 0x980   : > { %3182 = shalt.err (!%p3179_p1)
}
 0x981   : > { %2948 = dma.vmem_to_hbm [thread:$0]  (%p4036_p8), %s2440_s27, 128, %s4069_s9, [#allocation8]  }
 0x982   : > { %3210 = dma.done.wait (%p4036_p8), [#allocation8], 128  }
 0x983   : > { %3212 = vsyncadd (%p4036_p8), [#allocation8], 4294967168 }
 0x984 PF: > { %s22_s13 = sadd.s32 1, %s3223_s13   ;;  %s4089_s11 = smov %s3219_s12 }
 0x985   : > { %p19_p2 = scmp.ge.s32.totalorder %s22_s13, 5   ;;  %s4090_s12 = smov %s4092_s14 }
 0x987   :  { %21 = sbr.rel (!%p19_p2) target bundleno = 5 (0x5), region = 114 }
 0x98c   :  { %2452 = vsyncpa [#allocation7], 1 }
 0x98d   :  { %2454 = vsyncpa [#allocation7 + $0x1], 1 }
 0x98e   :  { %2455 = vsyncpa [#allocation8], 1 }
 0x98f   :  { %2457 = vsyncpa [#allocation8 + $0x1], 1 }

</bundles_post_ra>
